<compile_context>
chip_gen: v7x
topology: tpu7x:2x2x1
jax: 0.10.0
libtpu: 0.0.40
codegen_flags: <defaults>
</compile_context>

<pallas_src>
import functools
import math

import jax
import jax.numpy as jnp
from jax import lax
from jax.experimental import pallas as pl
from jax.experimental.pallas import tpu as pltpu

PAD_IDX = 0  # TODO(synk): MorphoDataset.Factor.PAD not defined in the spec; assume 0.

_VMEM_LIMIT = 32 * 1024 * 1024  # safe on v5e/v6e (128 MiB) and v7x (64 MiB)


def _row_tile(n, target=512):
    """Largest row-tile <= target that divides n (prefer multiples of 8)."""
    if n <= target:
        return n
    for t in range(target, 7, -1):
        if n % t == 0 and t % 8 == 0:
            return t
    return n  # fallback: single block (correct, just unpipelined)


# ----------------------------------------------------------------------------
# Fused attention sublayer kernel:
#   QKV projection + relative-position attention + wo + gate + LayerNorm
# ----------------------------------------------------------------------------

def _attn_gate_ln_kernel(heads, scale_inv, word_pos,
                         x_ref, xkv_ref, pos_ref, mask_ref,
                         wq_ref, wk_ref, wv_ref, wo_ref,
                         wgx_ref, wga_ref, bg_ref, lnw_ref, lnb_ref,
                         o_ref):
    Tq, D = x_ref.shape
    Tk = xkv_ref.shape[0]
    Dh = D // heads

    x = x_ref[...]                       # (Tq, D)  query source & residual
    xkv = xkv_ref[...]                   # (Tk, D)  key/value source

    # additive mask: int8 {0,1} -> 0 / -1e30 (underflows to exactly 0 after exp;
    # avoids -inf NaN for fully masked rows)
    neg = mask_ref[...].astype(jnp.float32) * jnp.float32(-1e30)     # (Tq, Tk)

    if not word_pos:
        pos_tab = pos_ref[...]           # (E, Dh) relative-position table
        E = pos_tab.shape[0]
        L = (E - 1) // 2
        qq3 = lax.broadcasted_iota(jnp.int32, (Tq, Tk, E), 0)
        kk3 = lax.broadcasted_iota(jnp.int32, (Tq, Tk, E), 1)
        ee3 = lax.broadcasted_iota(jnp.int32, (Tq, Tk, E), 2)
        idx3 = jnp.clip(kk3 - qq3, -L, L) + L
        sel = (idx3 == ee3).astype(jnp.float32)                      # (Tq, Tk, E)
    else:
        pos_b = pos_ref[...]             # (Tk, Dh) per-batch gathered positions

    attn = jnp.zeros((Tq, D), jnp.float32)
    for h in range(heads):
        # per-head projections (weights pre-split per head -> no lane slicing)
        qh = jnp.dot(x, wq_ref[h], preferred_element_type=jnp.float32) * scale_inv
        kh = jnp.dot(xkv, wk_ref[h], preferred_element_type=jnp.float32)
        vh = jnp.dot(xkv, wv_ref[h], preferred_element_type=jnp.float32)

        logits = jnp.dot(qh, kh.T, preferred_element_type=jnp.float32)   # (Tq,Tk)
        if word_pos:
            logits = logits + jnp.dot(qh, pos_b.T,
                                      preferred_element_type=jnp.float32)
        else:
            rel = jnp.dot(qh, pos_tab.T,
                          preferred_element_type=jnp.float32)            # (Tq, E)
            logits = logits + jnp.sum(sel * rel[:, None, :], axis=-1)
        logits = logits + neg

        m = jnp.max(logits, axis=-1, keepdims=True)
        e = jnp.exp(logits - m)
        p = e * pl.reciprocal(jnp.sum(e, axis=-1, keepdims=True), approx=True)
        oh = jnp.dot(p, vh, preferred_element_type=jnp.float32)          # (Tq, Dh)
        # fused output projection: accumulate per-head slice of wo
        attn = attn + jnp.dot(oh, wo_ref[h], preferred_element_type=jnp.float32)

    # gated residual:  gate = sigmoid([x ; attn] @ Wg + b)
    pre = (jnp.dot(x, wgx_ref[...], preferred_element_type=jnp.float32)
           + jnp.dot(attn, wga_ref[...], preferred_element_type=jnp.float32)
           + bg_ref[...])
    g = jax.nn.sigmoid(pre)
    z = g * x + (1.0 - g) * attn

    mu = jnp.mean(z, axis=-1, keepdims=True)
    var = jnp.mean((z - mu) ** 2, axis=-1, keepdims=True)
    o_ref[...] = (z - mu) * lax.rsqrt(var + 1e-5) * lnw_ref[...] + lnb_ref[...]


def attention_gate_ln(ap, gp, lnp, x, x_kv, mask_bool, heads, max_pos_len,
                      sentence_lengths=None):
    B, Tq, D = x.shape
    Tk = x_kv.shape[1]
    Dh = D // heads
    scale_inv = 1.0 / math.sqrt(D / heads)

    # mask -> (B, Tq, Tk) int8 (expanded to additive form in-kernel)
    mask = jnp.broadcast_to(mask_bool, (B, 1, Tq, Tk))[:, 0].astype(jnp.int8)

    if sentence_lengths is None:
        # char-relative positions: pass the small (2L+1, Dh) table, selection
        # is generated in-kernel from iotas.
        pos = ap["pos_emb"]
        pos_spec = pl.BlockSpec(pos.shape, lambda b: (0, 0))
        word_pos = False
    else:
        # word-relative positions: per-batch gather (pure indexing, XLA glue)
        kk = jnp.arange(Tk)
        lens = sentence_lengths
        starts = lens - jnp.cumsum(lens)
        qpos = jnp.repeat(starts, lens, total_repeat_length=B) + jnp.arange(B)
        idx = jnp.clip(kk[None, :] - qpos[:, None],
                       -max_pos_len, max_pos_len) + max_pos_len
        pos = ap["pos_emb"][idx]                       # (B, Tk, Dh)
        pos_spec = pl.BlockSpec((None, Tk, Dh), lambda b: (b, 0, 0))
        word_pos = True

    kern = functools.partial(_attn_gate_ln_kernel, heads, scale_inv, word_pos)
    return pl.pallas_call(
        kern,
        out_shape=jax.ShapeDtypeStruct((B, Tq, D), jnp.float32),
        grid=(B,),
        in_specs=[
            pl.BlockSpec((None, Tq, D), lambda b: (b, 0, 0)),      # x (q / residual)
            pl.BlockSpec((None, Tk, D), lambda b: (b, 0, 0)),      # x_kv
            pos_spec,                                              # rel-pos
            pl.BlockSpec((None, Tq, Tk), lambda b: (b, 0, 0)),     # mask (int8)
            pl.BlockSpec((heads, D, Dh), lambda b: (0, 0, 0)),     # wq (per head)
            pl.BlockSpec((heads, D, Dh), lambda b: (0, 0, 0)),     # wk
            pl.BlockSpec((heads, D, Dh), lambda b: (0, 0, 0)),     # wv
            pl.BlockSpec((heads, Dh, D), lambda b: (0, 0, 0)),     # wo (per head)
            pl.BlockSpec((D, D), lambda b: (0, 0)),                # gate W_x
            pl.BlockSpec((D, D), lambda b: (0, 0)),                # gate W_attn
            pl.BlockSpec((1, D), lambda b: (0, 0)),                # gate bias
            pl.BlockSpec((1, D), lambda b: (0, 0)),                # LN weight
            pl.BlockSpec((1, D), lambda b: (0, 0)),                # LN bias
        ],
        out_specs=pl.BlockSpec((None, Tq, D), lambda b: (b, 0, 0)),
        compiler_params=pltpu.CompilerParams(
            dimension_semantics=("parallel",),
            vmem_limit_bytes=_VMEM_LIMIT),
    )(x, x_kv, pos, mask,
      ap["wq"], ap["wk"], ap["wv"], ap["wo"],
      gp["w_x"], gp["w_a"], gp["b"], lnp["w"], lnp["b"])


# ----------------------------------------------------------------------------
# FFN + residual + LayerNorm (row-tiled)
# ----------------------------------------------------------------------------

def _dense_ln_kernel(x_ref, w1_ref, b1_ref, w2_ref, b2_ref, lnw_ref, lnb_ref,
                     o_ref):
    x = x_ref[...]
    h = jnp.maximum(
        jnp.dot(x, w1_ref[...], preferred_element_type=jnp.float32) + b1_ref[...],
        0.0)
    d = jnp.dot(h, w2_ref[...], preferred_element_type=jnp.float32) + b2_ref[...]
    z = x + d
    mu = jnp.mean(z, axis=-1, keepdims=True)
    var = jnp.mean((z - mu) ** 2, axis=-1, keepdims=True)
    o_ref[...] = (z - mu) * lax.rsqrt(var + 1e-5) * lnw_ref[...] + lnb_ref[...]


def dense_ln(dp, lnp, x):
    B, T, D = x.shape
    n = B * T
    tm = _row_tile(n)
    out = pl.pallas_call(
        _dense_ln_kernel,
        out_shape=jax.ShapeDtypeStruct((n, D), jnp.float32),
        grid=(n // tm,),
        in_specs=[
            pl.BlockSpec((tm, D), lambda i: (i, 0)),
            pl.BlockSpec((D, 4 * D), lambda i: (0, 0)),
            pl.BlockSpec((1, 4 * D), lambda i: (0, 0)),
            pl.BlockSpec((4 * D, D), lambda i: (0, 0)),
            pl.BlockSpec((1, D), lambda i: (0, 0)),
            pl.BlockSpec((1, D), lambda i: (0, 0)),
            pl.BlockSpec((1, D), lambda i: (0, 0)),
        ],
        out_specs=pl.BlockSpec((tm, D), lambda i: (i, 0)),
        compiler_params=pltpu.CompilerParams(
            dimension_semantics=("parallel",),
            vmem_limit_bytes=_VMEM_LIMIT),
    )(x.reshape(n, D), dp["w1"], dp["b1"], dp["w2"], dp["b2"],
      lnp["w"], lnp["b"])
    return out.reshape(B, T, D)


# ----------------------------------------------------------------------------
# Linear with bias (classifier head), row-tiled
# ----------------------------------------------------------------------------

def _linear_bias_kernel(x_ref, w_ref, b_ref, o_ref):
    o_ref[...] = (jnp.dot(x_ref[...], w_ref[...],
                          preferred_element_type=jnp.float32) + b_ref[...])


def linear_bias(x2d, w, b):
    n, din = x2d.shape
    dout = w.shape[1]
    tm = _row_tile(n)
    return pl.pallas_call(
        _linear_bias_kernel,
        out_shape=jax.ShapeDtypeStruct((n, dout), jnp.float32),
        grid=(n // tm,),
        in_specs=[pl.BlockSpec((tm, din), lambda i: (i, 0)),
                  pl.BlockSpec((din, dout), lambda i: (0, 0)),
                  pl.BlockSpec((1, dout), lambda i: (0, 0))],
        out_specs=pl.BlockSpec((tm, dout), lambda i: (i, 0)),
        compiler_params=pltpu.CompilerParams(
            dimension_semantics=("parallel",),
            vmem_limit_bytes=_VMEM_LIMIT),
    )(x2d, w, b)


# ----------------------------------------------------------------------------
# Model glue
# ----------------------------------------------------------------------------

def decoder_layer(p, char_enc, word_enc, x, look_ahead_mask, char_pad_mask,
                  word_pad_mask, sentence_lengths, heads, max_pos_len):
    x = attention_gate_ln(p["attn1"], p["gate1"], p["ln1"], x, x,
                          look_ahead_mask, heads, max_pos_len)
    x = attention_gate_ln(p["attn2"], p["gate2"], p["ln2"], x, char_enc,
                          char_pad_mask, heads, max_pos_len)
    # NOTE: the PyTorch reference reuses self.gate_1 here (not gate_3);
    # reproduced faithfully.
    x = attention_gate_ln(p["attn3"], p["gate1"], p["ln3"], x, word_enc,
                          word_pad_mask, heads, max_pos_len,
                          sentence_lengths=sentence_lengths)
    return dense_ln(p["dense"], p["ln4"], x)


def decoder_forward(params, char_enc, word_enc, tokens, look_ahead_mask,
                    char_pad_mask, word_pad_mask, sentence_lengths,
                    heads, max_pos_len):
    emb = params["embedding"]
    D = emb.shape[1]
    # TODO(synk): embedding row-gather kept in XLA glue (data-dependent gather).
    x = emb[tokens] * jnp.float32(math.sqrt(D))
    # self.dropout / char_dropout / word_dropout are identity at inference.
    for lp in params["layers"]:
        x = decoder_layer(lp, char_enc, word_enc, x, look_ahead_mask,
                          char_pad_mask, word_pad_mask, sentence_lengths,
                          heads, max_pos_len)
    B, T, _ = x.shape
    logits = linear_bias(x.reshape(B * T, D), params["cls_w"], params["cls_b"])
    return logits.reshape(B, T, -1)


# ----------------------------------------------------------------------------
# Parameters
# ----------------------------------------------------------------------------

def init_params(key, num_chars, D, H, n_layers, max_pos_len):
    Dh = D // H
    E = 2 * max_pos_len + 1
    keys = iter(jax.random.split(key, 16 + 32 * n_layers))

    def n(shape, std=1.0):
        return (std * jax.random.normal(next(keys), shape)).astype(jnp.float32)

    def attn_params():
        s = 1.0 / math.sqrt(D)
        # attention weights stored pre-split per head:
        #   wq/wk/wv: (H, D, Dh)   wo: (H, Dh, D)
        return {"pos_emb": n((E, Dh)),
                "wq": n((H, D, Dh), s), "wk": n((H, D, Dh), s),
                "wv": n((H, D, Dh), s), "wo": n((H, Dh, D), s)}

    def gate_params():
        s = 1.0 / math.sqrt(2 * D)
        return {"w_x": n((D, D), s), "w_a": n((D, D), s),
                "b": jnp.zeros((1, D), jnp.float32)}

    def ln_params():
        return {"w": jnp.ones((1, D), jnp.float32),
                "b": jnp.zeros((1, D), jnp.float32)}

    def layer_params():
        return {
            "attn1": attn_params(), "attn2": attn_params(), "attn3": attn_params(),
            "gate1": gate_params(), "gate2": gate_params(),
            # gate_3 exists in the PyTorch module but is never used in forward.
            "ln1": ln_params(), "ln2": ln_params(),
            "ln3": ln_params(), "ln4": ln_params(),
            "dense": {"w1": n((D, 4 * D), 0.015),
                      "b1": jnp.zeros((1, 4 * D), jnp.float32),
                      "w2": n((4 * D, D), 0.015),
                      "b2": jnp.zeros((1, D), jnp.float32)},
        }

    emb = n((num_chars, D))
    emb = emb.at[PAD_IDX].set(0.0)           # padding_idx row
    return {
        "embedding": emb,
        "layers": [layer_params() for _ in range(n_layers)],
        "cls_w": n((D, num_chars), 1.0 / math.sqrt(D)),
        "cls_b": jnp.zeros((1, num_chars), jnp.float32),
    }


# ----------------------------------------------------------------------------
# main
# ----------------------------------------------------------------------------

if __name__ == "__main__":
    B, T, D, H = 2, 8, 32, 4
    num_chars = 40
    n_layers = 2
    max_pos_len = 6

    key = jax.random.PRNGKey(0)
    kp, kt, kc, kw = jax.random.split(key, 4)
    params = init_params(kp, num_chars, D, H, n_layers, max_pos_len)

    tokens = jax.random.randint(kt, (B, T), 1, num_chars)
    char_enc = jax.random.normal(kc, (B, T, D), jnp.float32)
    word_enc = jax.random.normal(kw, (B, T, D), jnp.float32)

    # masks: True = position is masked out (torch masked_fill_ semantics)
    causal = jnp.arange(T)[None, :] > jnp.arange(T)[:, None]
    look_ahead_mask = jnp.broadcast_to(causal[None, None], (B, 1, T, T))
    char_pad_mask = (jnp.arange(T)[None, :] >= jnp.array([T, T - 2])[:, None]
                     )[:, None, None, :]                       # (B,1,1,T)
    word_pad_mask = (jnp.arange(T)[None, :] >= jnp.array([T - 1, T - 3])[:, None]
                     )[:, None, None, :]                       # (B,1,1,T)
    sentence_lengths = jnp.array([2], dtype=jnp.int32)         # sums to B

    out = decoder_forward(params, char_enc, word_enc, tokens, look_ahead_mask,
                          char_pad_mask, word_pad_mask, sentence_lengths,
                          H, max_pos_len)
    jax.block_until_ready(out)

    assert out.shape == (B, T, num_chars)
    assert bool(jnp.all(jnp.isfinite(out)))
    print("KERNEL_OK")
</pallas_src>

<mosaic_0001>
module attributes {stable_mosaic.version = 11 : i64} {
  func.func @_attn_gate_ln_kernel(%arg0: i32, %arg1: memref<1x8x32xf32, #tpu.memory_space<vmem>>, %arg2: memref<1x8x32xf32, #tpu.memory_space<vmem>>, %arg3: memref<13x8xf32, #tpu.memory_space<vmem>>, %arg4: memref<1x8x8xi8, #tpu.memory_space<vmem>>, %arg5: memref<4x32x8xf32, #tpu.memory_space<vmem>>, %arg6: memref<4x32x8xf32, #tpu.memory_space<vmem>>, %arg7: memref<4x32x8xf32, #tpu.memory_space<vmem>>, %arg8: memref<4x8x32xf32, #tpu.memory_space<vmem>>, %arg9: memref<32x32xf32, #tpu.memory_space<vmem>>, %arg10: memref<32x32xf32, #tpu.memory_space<vmem>>, %arg11: memref<1x32xf32, #tpu.memory_space<vmem>>, %arg12: memref<1x32xf32, #tpu.memory_space<vmem>>, %arg13: memref<1x32xf32, #tpu.memory_space<vmem>>, %arg14: memref<1x8x32xf32, #tpu.memory_space<vmem>>) attributes {dimension_semantics = [#tpu.dimension_semantics<parallel>], iteration_bounds = array<i64: 2>, scalar_prefetch = 0 : i64, scratch_operands = 0 : i64, tpu.core_type = #tpu.core_type<tc>, window_params = [{transform_indices = @transform_0, window_bounds = array<i64: 1, 8, 32>}, {transform_indices = @transform_1, window_bounds = array<i64: 1, 8, 32>}, {pipeline_mode = #tpu.pipeline_mode<synchronous>, transform_indices = @transform_2, window_bounds = array<i64: 13, 8>}, {transform_indices = @transform_3, window_bounds = array<i64: 1, 8, 8>}, {pipeline_mode = #tpu.pipeline_mode<synchronous>, transform_indices = @transform_4, window_bounds = array<i64: 4, 32, 8>}, {pipeline_mode = #tpu.pipeline_mode<synchronous>, transform_indices = @transform_5, window_bounds = array<i64: 4, 32, 8>}, {pipeline_mode = #tpu.pipeline_mode<synchronous>, transform_indices = @transform_6, window_bounds = array<i64: 4, 32, 8>}, {pipeline_mode = #tpu.pipeline_mode<synchronous>, transform_indices = @transform_7, window_bounds = array<i64: 4, 8, 32>}, {pipeline_mode = #tpu.pipeline_mode<synchronous>, transform_indices = @transform_8, window_bounds = array<i64: 32, 32>}, {pipeline_mode = #tpu.pipeline_mode<synchronous>, transform_indices = @transform_9, window_bounds = array<i64: 32, 32>}, {pipeline_mode = #tpu.pipeline_mode<synchronous>, transform_indices = @transform_10, window_bounds = array<i64: 1, 32>}, {pipeline_mode = #tpu.pipeline_mode<synchronous>, transform_indices = @transform_11, window_bounds = array<i64: 1, 32>}, {pipeline_mode = #tpu.pipeline_mode<synchronous>, transform_indices = @transform_12, window_bounds = array<i64: 1, 32>}, {transform_indices = @transform_13, window_bounds = array<i64: 1, 8, 32>}]} {
    %c0 = arith.constant 0 : index
    %c0_0 = arith.constant 0 : index
    %c0_1 = arith.constant 0 : index
    %0 = vector.load %arg1[%c0, %c0_0, %c0_1] : memref<1x8x32xf32, #tpu.memory_space<vmem>>, vector<1x8x32xf32>
    %1 = vector.shape_cast %0 : vector<1x8x32xf32> to vector<8x32xf32>
    %c0_2 = arith.constant 0 : index
    %c0_3 = arith.constant 0 : index
    %c0_4 = arith.constant 0 : index
    %2 = vector.load %arg2[%c0_2, %c0_3, %c0_4] : memref<1x8x32xf32, #tpu.memory_space<vmem>>, vector<1x8x32xf32>
    %3 = vector.shape_cast %2 : vector<1x8x32xf32> to vector<8x32xf32>
    %c0_5 = arith.constant 0 : index
    %c0_6 = arith.constant 0 : index
    %c0_7 = arith.constant 0 : index
    %4 = vector.load %arg4[%c0_5, %c0_6, %c0_7] : memref<1x8x8xi8, #tpu.memory_space<vmem>>, vector<1x8x8xi8>
    %5 = vector.shape_cast %4 : vector<1x8x8xi8> to vector<8x8xi8>
    %6 = arith.sitofp %5 : vector<8x8xi8> to vector<8x8xf32>
    %cst = arith.constant -1.000000e+30 : f32
    %7 = vector.broadcast %cst : f32 to vector<8x8xf32>
    %8 = arith.mulf %6, %7 : vector<8x8xf32>
    %c0_8 = arith.constant 0 : index
    %c0_9 = arith.constant 0 : index
    %9 = vector.load %arg3[%c0_8, %c0_9] : memref<13x8xf32, #tpu.memory_space<vmem>>, vector<13x8xf32>
    %10 = tpu.iota {dimensions = array<i32: 0>} : vector<8x8x13xi32>
    %11 = tpu.iota {dimensions = array<i32: 1>} : vector<8x8x13xi32>
    %12 = tpu.iota {dimensions = array<i32: 2>} : vector<8x8x13xi32>
    %13 = arith.subi %11, %10 : vector<8x8x13xi32>
    %c-6_i32 = arith.constant -6 : i32
    %c6_i32 = arith.constant 6 : i32
    %14 = vector.broadcast %c-6_i32 : i32 to vector<8x8x13xi32>
    %15 = arith.maxsi %14, %13 : vector<8x8x13xi32>
    %16 = vector.broadcast %c6_i32 : i32 to vector<8x8x13xi32>
    %17 = arith.minsi %16, %15 : vector<8x8x13xi32>
    %c6_i32_10 = arith.constant 6 : i32
    %18 = vector.broadcast %c6_i32_10 : i32 to vector<8x8x13xi32>
    %19 = arith.addi %17, %18 : vector<8x8x13xi32>
    %20 = arith.cmpi eq, %19, %12 : vector<8x8x13xi32>
    %21 = arith.extui %20 : vector<8x8x13xi1> to vector<8x8x13xi32>
    %22 = arith.sitofp %21 : vector<8x8x13xi32> to vector<8x8x13xf32>
    %cst_11 = arith.constant 0.000000e+00 : f32
    %23 = vector.broadcast %cst_11 : f32 to vector<8x32xf32>
    %c0_12 = arith.constant 0 : index
    %c0_13 = arith.constant 0 : index
    %c0_14 = arith.constant 0 : index
    %24 = vector.load %arg5[%c0_12, %c0_13, %c0_14] : memref<4x32x8xf32, #tpu.memory_space<vmem>>, vector<1x32x8xf32>
    %25 = vector.shape_cast %24 : vector<1x32x8xf32> to vector<32x8xf32>
    %cst_15 = arith.constant dense<0.000000e+00> : vector<8x8xf32>
    %26 = tpu.matmul %1, %25, %cst_15 {dimension_numbers = #tpu.dot_dimension_numbers<[1], [0], [0], [1], [0, 0, 1, 1], [], []>} : vector<8x32xf32>, vector<32x8xf32>, vector<8x8xf32> -> vector<8x8xf32>
    %cst_16 = arith.constant 0.353553385 : f32
    %27 = vector.broadcast %cst_16 : f32 to vector<8x8xf32>
    %28 = arith.mulf %26, %27 : vector<8x8xf32>
    %c0_17 = arith.constant 0 : index
    %c0_18 = arith.constant 0 : index
    %c0_19 = arith.constant 0 : index
    %29 = vector.load %arg6[%c0_17, %c0_18, %c0_19] : memref<4x32x8xf32, #tpu.memory_space<vmem>>, vector<1x32x8xf32>
    %30 = vector.shape_cast %29 : vector<1x32x8xf32> to vector<32x8xf32>
    %cst_20 = arith.constant dense<0.000000e+00> : vector<8x8xf32>
    %31 = tpu.matmul %3, %30, %cst_20 {dimension_numbers = #tpu.dot_dimension_numbers<[1], [0], [0], [1], [0, 0, 1, 1], [], []>} : vector<8x32xf32>, vector<32x8xf32>, vector<8x8xf32> -> vector<8x8xf32>
    %c0_21 = arith.constant 0 : index
    %c0_22 = arith.constant 0 : index
    %c0_23 = arith.constant 0 : index
    %32 = vector.load %arg7[%c0_21, %c0_22, %c0_23] : memref<4x32x8xf32, #tpu.memory_space<vmem>>, vector<1x32x8xf32>
    %33 = vector.shape_cast %32 : vector<1x32x8xf32> to vector<32x8xf32>
    %cst_24 = arith.constant dense<0.000000e+00> : vector<8x8xf32>
    %34 = tpu.matmul %3, %33, %cst_24 {dimension_numbers = #tpu.dot_dimension_numbers<[1], [0], [0], [1], [0, 0, 1, 1], [], []>} : vector<8x32xf32>, vector<32x8xf32>, vector<8x8xf32> -> vector<8x8xf32>
    %35 = tpu.transpose %31, [1, 0] : vector<8x8xf32> -> vector<8x8xf32>
    %cst_25 = arith.constant dense<0.000000e+00> : vector<8x8xf32>
    %36 = tpu.matmul %28, %35, %cst_25 {dimension_numbers = #tpu.dot_dimension_numbers<[1], [0], [0], [1], [0, 0, 1, 1], [], []>} : vector<8x8xf32>, vector<8x8xf32>, vector<8x8xf32> -> vector<8x8xf32>
    %37 = tpu.transpose %9, [1, 0] : vector<13x8xf32> -> vector<8x13xf32>
    %cst_26 = arith.constant dense<0.000000e+00> : vector<8x13xf32>
    %38 = tpu.matmul %28, %37, %cst_26 {dimension_numbers = #tpu.dot_dimension_numbers<[1], [0], [0], [1], [0, 0, 1, 1], [], []>} : vector<8x8xf32>, vector<8x13xf32>, vector<8x13xf32> -> vector<8x13xf32>
    %39 = vector.shape_cast %38 : vector<8x13xf32> to vector<8x1x13xf32>
    %40 = vector.broadcast %39 : vector<8x1x13xf32> to vector<8x8x13xf32>
    %41 = arith.mulf %22, %40 : vector<8x8x13xf32>
    %cst_27 = arith.constant dense<0.000000e+00> : vector<8x8xf32>
    %42 = vector.multi_reduction <add>, %41, %cst_27 [2] : vector<8x8x13xf32> to vector<8x8xf32>
    %43 = arith.addf %36, %42 : vector<8x8xf32>
    %44 = arith.addf %43, %8 : vector<8x8xf32>
    %cst_28 = arith.constant dense<0xFF800000> : vector<8xf32>
    %45 = vector.multi_reduction <maximumf>, %44, %cst_28 [1] : vector<8x8xf32> to vector<8xf32>
    %46 = vector.shape_cast %45 : vector<8xf32> to vector<8x1xf32>
    %47 = vector.broadcast %46 : vector<8x1xf32> to vector<8x8xf32>
    %48 = arith.subf %44, %47 : vector<8x8xf32>
    %49 = math.exp %48 : vector<8x8xf32>
    %cst_29 = arith.constant dense<0.000000e+00> : vector<8xf32>
    %50 = vector.multi_reduction <add>, %49, %cst_29 [1] : vector<8x8xf32> to vector<8xf32>
    %51 = vector.shape_cast %50 : vector<8xf32> to vector<8x1xf32>
    %52 = tpu.reciprocal %51 {approx = true} : vector<8x1xf32> -> vector<8x1xf32>
    %53 = vector.broadcast %52 : vector<8x1xf32> to vector<8x8xf32>
    %54 = arith.mulf %49, %53 : vector<8x8xf32>
    %cst_30 = arith.constant dense<0.000000e+00> : vector<8x8xf32>
    %55 = tpu.matmul %54, %34, %cst_30 {dimension_numbers = #tpu.dot_dimension_numbers<[1], [0], [0], [1], [0, 0, 1, 1], [], []>} : vector<8x8xf32>, vector<8x8xf32>, vector<8x8xf32> -> vector<8x8xf32>
    %c0_31 = arith.constant 0 : index
    %c0_32 = arith.constant 0 : index
    %c0_33 = arith.constant 0 : index
    %56 = vector.load %arg8[%c0_31, %c0_32, %c0_33] : memref<4x8x32xf32, #tpu.memory_space<vmem>>, vector<1x8x32xf32>
    %57 = vector.shape_cast %56 : vector<1x8x32xf32> to vector<8x32xf32>
    %cst_34 = arith.constant dense<0.000000e+00> : vector<8x32xf32>
    %58 = tpu.matmul %55, %57, %cst_34 {dimension_numbers = #tpu.dot_dimension_numbers<[1], [0], [0], [1], [0, 0, 1, 1], [], []>} : vector<8x8xf32>, vector<8x32xf32>, vector<8x32xf32> -> vector<8x32xf32>
    %59 = arith.addf %23, %58 : vector<8x32xf32>
    %c1 = arith.constant 1 : index
    %c0_35 = arith.constant 0 : index
    %c0_36 = arith.constant 0 : index
    %60 = vector.load %arg5[%c1, %c0_35, %c0_36] : memref<4x32x8xf32, #tpu.memory_space<vmem>>, vector<1x32x8xf32>
    %61 = vector.shape_cast %60 : vector<1x32x8xf32> to vector<32x8xf32>
    %cst_37 = arith.constant dense<0.000000e+00> : vector<8x8xf32>
    %62 = tpu.matmul %1, %61, %cst_37 {dimension_numbers = #tpu.dot_dimension_numbers<[1], [0], [0], [1], [0, 0, 1, 1], [], []>} : vector<8x32xf32>, vector<32x8xf32>, vector<8x8xf32> -> vector<8x8xf32>
    %cst_38 = arith.constant 0.353553385 : f32
    %63 = vector.broadcast %cst_38 : f32 to vector<8x8xf32>
    %64 = arith.mulf %62, %63 : vector<8x8xf32>
    %c1_39 = arith.constant 1 : index
    %c0_40 = arith.constant 0 : index
    %c0_41 = arith.constant 0 : index
    %65 = vector.load %arg6[%c1_39, %c0_40, %c0_41] : memref<4x32x8xf32, #tpu.memory_space<vmem>>, vector<1x32x8xf32>
    %66 = vector.shape_cast %65 : vector<1x32x8xf32> to vector<32x8xf32>
    %cst_42 = arith.constant dense<0.000000e+00> : vector<8x8xf32>
    %67 = tpu.matmul %3, %66, %cst_42 {dimension_numbers = #tpu.dot_dimension_numbers<[1], [0], [0], [1], [0, 0, 1, 1], [], []>} : vector<8x32xf32>, vector<32x8xf32>, vector<8x8xf32> -> vector<8x8xf32>
    %c1_43 = arith.constant 1 : index
    %c0_44 = arith.constant 0 : index
    %c0_45 = arith.constant 0 : index
    %68 = vector.load %arg7[%c1_43, %c0_44, %c0_45] : memref<4x32x8xf32, #tpu.memory_space<vmem>>, vector<1x32x8xf32>
    %69 = vector.shape_cast %68 : vector<1x32x8xf32> to vector<32x8xf32>
    %cst_46 = arith.constant dense<0.000000e+00> : vector<8x8xf32>
    %70 = tpu.matmul %3, %69, %cst_46 {dimension_numbers = #tpu.dot_dimension_numbers<[1], [0], [0], [1], [0, 0, 1, 1], [], []>} : vector<8x32xf32>, vector<32x8xf32>, vector<8x8xf32> -> vector<8x8xf32>
    %71 = tpu.transpose %67, [1, 0] : vector<8x8xf32> -> vector<8x8xf32>
    %cst_47 = arith.constant dense<0.000000e+00> : vector<8x8xf32>
    %72 = tpu.matmul %64, %71, %cst_47 {dimension_numbers = #tpu.dot_dimension_numbers<[1], [0], [0], [1], [0, 0, 1, 1], [], []>} : vector<8x8xf32>, vector<8x8xf32>, vector<8x8xf32> -> vector<8x8xf32>
    %73 = tpu.transpose %9, [1, 0] : vector<13x8xf32> -> vector<8x13xf32>
    %cst_48 = arith.constant dense<0.000000e+00> : vector<8x13xf32>
    %74 = tpu.matmul %64, %73, %cst_48 {dimension_numbers = #tpu.dot_dimension_numbers<[1], [0], [0], [1], [0, 0, 1, 1], [], []>} : vector<8x8xf32>, vector<8x13xf32>, vector<8x13xf32> -> vector<8x13xf32>
    %75 = vector.shape_cast %74 : vector<8x13xf32> to vector<8x1x13xf32>
    %76 = vector.broadcast %75 : vector<8x1x13xf32> to vector<8x8x13xf32>
    %77 = arith.mulf %22, %76 : vector<8x8x13xf32>
    %cst_49 = arith.constant dense<0.000000e+00> : vector<8x8xf32>
    %78 = vector.multi_reduction <add>, %77, %cst_49 [2] : vector<8x8x13xf32> to vector<8x8xf32>
    %79 = arith.addf %72, %78 : vector<8x8xf32>
    %80 = arith.addf %79, %8 : vector<8x8xf32>
    %cst_50 = arith.constant dense<0xFF800000> : vector<8xf32>
    %81 = vector.multi_reduction <maximumf>, %80, %cst_50 [1] : vector<8x8xf32> to vector<8xf32>
    %82 = vector.shape_cast %81 : vector<8xf32> to vector<8x1xf32>
    %83 = vector.broadcast %82 : vector<8x1xf32> to vector<8x8xf32>
    %84 = arith.subf %80, %83 : vector<8x8xf32>
    %85 = math.exp %84 : vector<8x8xf32>
    %cst_51 = arith.constant dense<0.000000e+00> : vector<8xf32>
    %86 = vector.multi_reduction <add>, %85, %cst_51 [1] : vector<8x8xf32> to vector<8xf32>
    %87 = vector.shape_cast %86 : vector<8xf32> to vector<8x1xf32>
    %88 = tpu.reciprocal %87 {approx = true} : vector<8x1xf32> -> vector<8x1xf32>
    %89 = vector.broadcast %88 : vector<8x1xf32> to vector<8x8xf32>
    %90 = arith.mulf %85, %89 : vector<8x8xf32>
    %cst_52 = arith.constant dense<0.000000e+00> : vector<8x8xf32>
    %91 = tpu.matmul %90, %70, %cst_52 {dimension_numbers = #tpu.dot_dimension_numbers<[1], [0], [0], [1], [0, 0, 1, 1], [], []>} : vector<8x8xf32>, vector<8x8xf32>, vector<8x8xf32> -> vector<8x8xf32>
    %c1_53 = arith.constant 1 : index
    %c0_54 = arith.constant 0 : index
    %c0_55 = arith.constant 0 : index
    %92 = vector.load %arg8[%c1_53, %c0_54, %c0_55] : memref<4x8x32xf32, #tpu.memory_space<vmem>>, vector<1x8x32xf32>
    %93 = vector.shape_cast %92 : vector<1x8x32xf32> to vector<8x32xf32>
    %cst_56 = arith.constant dense<0.000000e+00> : vector<8x32xf32>
    %94 = tpu.matmul %91, %93, %cst_56 {dimension_numbers = #tpu.dot_dimension_numbers<[1], [0], [0], [1], [0, 0, 1, 1], [], []>} : vector<8x8xf32>, vector<8x32xf32>, vector<8x32xf32> -> vector<8x32xf32>
    %95 = arith.addf %59, %94 : vector<8x32xf32>
    %c2 = arith.constant 2 : index
    %c0_57 = arith.constant 0 : index
    %c0_58 = arith.constant 0 : index
    %96 = vector.load %arg5[%c2, %c0_57, %c0_58] : memref<4x32x8xf32, #tpu.memory_space<vmem>>, vector<1x32x8xf32>
    %97 = vector.shape_cast %96 : vector<1x32x8xf32> to vector<32x8xf32>
    %cst_59 = arith.constant dense<0.000000e+00> : vector<8x8xf32>
    %98 = tpu.matmul %1, %97, %cst_59 {dimension_numbers = #tpu.dot_dimension_numbers<[1], [0], [0], [1], [0, 0, 1, 1], [], []>} : vector<8x32xf32>, vector<32x8xf32>, vector<8x8xf32> -> vector<8x8xf32>
    %cst_60 = arith.constant 0.353553385 : f32
    %99 = vector.broadcast %cst_60 : f32 to vector<8x8xf32>
    %100 = arith.mulf %98, %99 : vector<8x8xf32>
    %c2_61 = arith.constant 2 : index
    %c0_62 = arith.constant 0 : index
    %c0_63 = arith.constant 0 : index
    %101 = vector.load %arg6[%c2_61, %c0_62, %c0_63] : memref<4x32x8xf32, #tpu.memory_space<vmem>>, vector<1x32x8xf32>
    %102 = vector.shape_cast %101 : vector<1x32x8xf32> to vector<32x8xf32>
    %cst_64 = arith.constant dense<0.000000e+00> : vector<8x8xf32>
    %103 = tpu.matmul %3, %102, %cst_64 {dimension_numbers = #tpu.dot_dimension_numbers<[1], [0], [0], [1], [0, 0, 1, 1], [], []>} : vector<8x32xf32>, vector<32x8xf32>, vector<8x8xf32> -> vector<8x8xf32>
    %c2_65 = arith.constant 2 : index
    %c0_66 = arith.constant 0 : index
    %c0_67 = arith.constant 0 : index
    %104 = vector.load %arg7[%c2_65, %c0_66, %c0_67] : memref<4x32x8xf32, #tpu.memory_space<vmem>>, vector<1x32x8xf32>
    %105 = vector.shape_cast %104 : vector<1x32x8xf32> to vector<32x8xf32>
    %cst_68 = arith.constant dense<0.000000e+00> : vector<8x8xf32>
    %106 = tpu.matmul %3, %105, %cst_68 {dimension_numbers = #tpu.dot_dimension_numbers<[1], [0], [0], [1], [0, 0, 1, 1], [], []>} : vector<8x32xf32>, vector<32x8xf32>, vector<8x8xf32> -> vector<8x8xf32>
    %107 = tpu.transpose %103, [1, 0] : vector<8x8xf32> -> vector<8x8xf32>
    %cst_69 = arith.constant dense<0.000000e+00> : vector<8x8xf32>
    %108 = tpu.matmul %100, %107, %cst_69 {dimension_numbers = #tpu.dot_dimension_numbers<[1], [0], [0], [1], [0, 0, 1, 1], [], []>} : vector<8x8xf32>, vector<8x8xf32>, vector<8x8xf32> -> vector<8x8xf32>
    %109 = tpu.transpose %9, [1, 0] : vector<13x8xf32> -> vector<8x13xf32>
    %cst_70 = arith.constant dense<0.000000e+00> : vector<8x13xf32>
    %110 = tpu.matmul %100, %109, %cst_70 {dimension_numbers = #tpu.dot_dimension_numbers<[1], [0], [0], [1], [0, 0, 1, 1], [], []>} : vector<8x8xf32>, vector<8x13xf32>, vector<8x13xf32> -> vector<8x13xf32>
    %111 = vector.shape_cast %110 : vector<8x13xf32> to vector<8x1x13xf32>
    %112 = vector.broadcast %111 : vector<8x1x13xf32> to vector<8x8x13xf32>
    %113 = arith.mulf %22, %112 : vector<8x8x13xf32>
    %cst_71 = arith.constant dense<0.000000e+00> : vector<8x8xf32>
    %114 = vector.multi_reduction <add>, %113, %cst_71 [2] : vector<8x8x13xf32> to vector<8x8xf32>
    %115 = arith.addf %108, %114 : vector<8x8xf32>
    %116 = arith.addf %115, %8 : vector<8x8xf32>
    %cst_72 = arith.constant dense<0xFF800000> : vector<8xf32>
    %117 = vector.multi_reduction <maximumf>, %116, %cst_72 [1] : vector<8x8xf32> to vector<8xf32>
    %118 = vector.shape_cast %117 : vector<8xf32> to vector<8x1xf32>
    %119 = vector.broadcast %118 : vector<8x1xf32> to vector<8x8xf32>
    %120 = arith.subf %116, %119 : vector<8x8xf32>
    %121 = math.exp %120 : vector<8x8xf32>
    %cst_73 = arith.constant dense<0.000000e+00> : vector<8xf32>
    %122 = vector.multi_reduction <add>, %121, %cst_73 [1] : vector<8x8xf32> to vector<8xf32>
    %123 = vector.shape_cast %122 : vector<8xf32> to vector<8x1xf32>
    %124 = tpu.reciprocal %123 {approx = true} : vector<8x1xf32> -> vector<8x1xf32>
    %125 = vector.broadcast %124 : vector<8x1xf32> to vector<8x8xf32>
    %126 = arith.mulf %121, %125 : vector<8x8xf32>
    %cst_74 = arith.constant dense<0.000000e+00> : vector<8x8xf32>
    %127 = tpu.matmul %126, %106, %cst_74 {dimension_numbers = #tpu.dot_dimension_numbers<[1], [0], [0], [1], [0, 0, 1, 1], [], []>} : vector<8x8xf32>, vector<8x8xf32>, vector<8x8xf32> -> vector<8x8xf32>
    %c2_75 = arith.constant 2 : index
    %c0_76 = arith.constant 0 : index
    %c0_77 = arith.constant 0 : index
    %128 = vector.load %arg8[%c2_75, %c0_76, %c0_77] : memref<4x8x32xf32, #tpu.memory_space<vmem>>, vector<1x8x32xf32>
    %129 = vector.shape_cast %128 : vector<1x8x32xf32> to vector<8x32xf32>
    %cst_78 = arith.constant dense<0.000000e+00> : vector<8x32xf32>
    %130 = tpu.matmul %127, %129, %cst_78 {dimension_numbers = #tpu.dot_dimension_numbers<[1], [0], [0], [1], [0, 0, 1, 1], [], []>} : vector<8x8xf32>, vector<8x32xf32>, vector<8x32xf32> -> vector<8x32xf32>
    %131 = arith.addf %95, %130 : vector<8x32xf32>
    %c3 = arith.constant 3 : index
    %c0_79 = arith.constant 0 : index
    %c0_80 = arith.constant 0 : index
    %132 = vector.load %arg5[%c3, %c0_79, %c0_80] : memref<4x32x8xf32, #tpu.memory_space<vmem>>, vector<1x32x8xf32>
    %133 = vector.shape_cast %132 : vector<1x32x8xf32> to vector<32x8xf32>
    %cst_81 = arith.constant dense<0.000000e+00> : vector<8x8xf32>
    %134 = tpu.matmul %1, %133, %cst_81 {dimension_numbers = #tpu.dot_dimension_numbers<[1], [0], [0], [1], [0, 0, 1, 1], [], []>} : vector<8x32xf32>, vector<32x8xf32>, vector<8x8xf32> -> vector<8x8xf32>
    %cst_82 = arith.constant 0.353553385 : f32
    %135 = vector.broadcast %cst_82 : f32 to vector<8x8xf32>
    %136 = arith.mulf %134, %135 : vector<8x8xf32>
    %c3_83 = arith.constant 3 : index
    %c0_84 = arith.constant 0 : index
    %c0_85 = arith.constant 0 : index
    %137 = vector.load %arg6[%c3_83, %c0_84, %c0_85] : memref<4x32x8xf32, #tpu.memory_space<vmem>>, vector<1x32x8xf32>
    %138 = vector.shape_cast %137 : vector<1x32x8xf32> to vector<32x8xf32>
    %cst_86 = arith.constant dense<0.000000e+00> : vector<8x8xf32>
    %139 = tpu.matmul %3, %138, %cst_86 {dimension_numbers = #tpu.dot_dimension_numbers<[1], [0], [0], [1], [0, 0, 1, 1], [], []>} : vector<8x32xf32>, vector<32x8xf32>, vector<8x8xf32> -> vector<8x8xf32>
    %c3_87 = arith.constant 3 : index
    %c0_88 = arith.constant 0 : index
    %c0_89 = arith.constant 0 : index
    %140 = vector.load %arg7[%c3_87, %c0_88, %c0_89] : memref<4x32x8xf32, #tpu.memory_space<vmem>>, vector<1x32x8xf32>
    %141 = vector.shape_cast %140 : vector<1x32x8xf32> to vector<32x8xf32>
    %cst_90 = arith.constant dense<0.000000e+00> : vector<8x8xf32>
    %142 = tpu.matmul %3, %141, %cst_90 {dimension_numbers = #tpu.dot_dimension_numbers<[1], [0], [0], [1], [0, 0, 1, 1], [], []>} : vector<8x32xf32>, vector<32x8xf32>, vector<8x8xf32> -> vector<8x8xf32>
    %143 = tpu.transpose %139, [1, 0] : vector<8x8xf32> -> vector<8x8xf32>
    %cst_91 = arith.constant dense<0.000000e+00> : vector<8x8xf32>
    %144 = tpu.matmul %136, %143, %cst_91 {dimension_numbers = #tpu.dot_dimension_numbers<[1], [0], [0], [1], [0, 0, 1, 1], [], []>} : vector<8x8xf32>, vector<8x8xf32>, vector<8x8xf32> -> vector<8x8xf32>
    %145 = tpu.transpose %9, [1, 0] : vector<13x8xf32> -> vector<8x13xf32>
    %cst_92 = arith.constant dense<0.000000e+00> : vector<8x13xf32>
    %146 = tpu.matmul %136, %145, %cst_92 {dimension_numbers = #tpu.dot_dimension_numbers<[1], [0], [0], [1], [0, 0, 1, 1], [], []>} : vector<8x8xf32>, vector<8x13xf32>, vector<8x13xf32> -> vector<8x13xf32>
    %147 = vector.shape_cast %146 : vector<8x13xf32> to vector<8x1x13xf32>
    %148 = vector.broadcast %147 : vector<8x1x13xf32> to vector<8x8x13xf32>
    %149 = arith.mulf %22, %148 : vector<8x8x13xf32>
    %cst_93 = arith.constant dense<0.000000e+00> : vector<8x8xf32>
    %150 = vector.multi_reduction <add>, %149, %cst_93 [2] : vector<8x8x13xf32> to vector<8x8xf32>
    %151 = arith.addf %144, %150 : vector<8x8xf32>
    %152 = arith.addf %151, %8 : vector<8x8xf32>
    %cst_94 = arith.constant dense<0xFF800000> : vector<8xf32>
    %153 = vector.multi_reduction <maximumf>, %152, %cst_94 [1] : vector<8x8xf32> to vector<8xf32>
    %154 = vector.shape_cast %153 : vector<8xf32> to vector<8x1xf32>
    %155 = vector.broadcast %154 : vector<8x1xf32> to vector<8x8xf32>
    %156 = arith.subf %152, %155 : vector<8x8xf32>
    %157 = math.exp %156 : vector<8x8xf32>
    %cst_95 = arith.constant dense<0.000000e+00> : vector<8xf32>
    %158 = vector.multi_reduction <add>, %157, %cst_95 [1] : vector<8x8xf32> to vector<8xf32>
    %159 = vector.shape_cast %158 : vector<8xf32> to vector<8x1xf32>
    %160 = tpu.reciprocal %159 {approx = true} : vector<8x1xf32> -> vector<8x1xf32>
    %161 = vector.broadcast %160 : vector<8x1xf32> to vector<8x8xf32>
    %162 = arith.mulf %157, %161 : vector<8x8xf32>
    %cst_96 = arith.constant dense<0.000000e+00> : vector<8x8xf32>
    %163 = tpu.matmul %162, %142, %cst_96 {dimension_numbers = #tpu.dot_dimension_numbers<[1], [0], [0], [1], [0, 0, 1, 1], [], []>} : vector<8x8xf32>, vector<8x8xf32>, vector<8x8xf32> -> vector<8x8xf32>
    %c3_97 = arith.constant 3 : index
    %c0_98 = arith.constant 0 : index
    %c0_99 = arith.constant 0 : index
    %164 = vector.load %arg8[%c3_97, %c0_98, %c0_99] : memref<4x8x32xf32, #tpu.memory_space<vmem>>, vector<1x8x32xf32>
    %165 = vector.shape_cast %164 : vector<1x8x32xf32> to vector<8x32xf32>
    %cst_100 = arith.constant dense<0.000000e+00> : vector<8x32xf32>
    %166 = tpu.matmul %163, %165, %cst_100 {dimension_numbers = #tpu.dot_dimension_numbers<[1], [0], [0], [1], [0, 0, 1, 1], [], []>} : vector<8x8xf32>, vector<8x32xf32>, vector<8x32xf32> -> vector<8x32xf32>
    %167 = arith.addf %131, %166 : vector<8x32xf32>
    %c0_101 = arith.constant 0 : index
    %c0_102 = arith.constant 0 : index
    %168 = vector.load %arg9[%c0_101, %c0_102] : memref<32x32xf32, #tpu.memory_space<vmem>>, vector<32x32xf32>
    %cst_103 = arith.constant dense<0.000000e+00> : vector<8x32xf32>
    %169 = tpu.matmul %1, %168, %cst_103 {dimension_numbers = #tpu.dot_dimension_numbers<[1], [0], [0], [1], [0, 0, 1, 1], [], []>} : vector<8x32xf32>, vector<32x32xf32>, vector<8x32xf32> -> vector<8x32xf32>
    %c0_104 = arith.constant 0 : index
    %c0_105 = arith.constant 0 : index
    %170 = vector.load %arg10[%c0_104, %c0_105] : memref<32x32xf32, #tpu.memory_space<vmem>>, vector<32x32xf32>
    %cst_106 = arith.constant dense<0.000000e+00> : vector<8x32xf32>
    %171 = tpu.matmul %167, %170, %cst_106 {dimension_numbers = #tpu.dot_dimension_numbers<[1], [0], [0], [1], [0, 0, 1, 1], [], []>} : vector<8x32xf32>, vector<32x32xf32>, vector<8x32xf32> -> vector<8x32xf32>
    %172 = arith.addf %169, %171 : vector<8x32xf32>
    %c0_107 = arith.constant 0 : index
    %c0_108 = arith.constant 0 : index
    %173 = vector.load %arg11[%c0_107, %c0_108] : memref<1x32xf32, #tpu.memory_space<vmem>>, vector<1x32xf32>
    %174 = vector.broadcast %173 : vector<1x32xf32> to vector<8x32xf32>
    %175 = arith.addf %172, %174 : vector<8x32xf32>
    %176 = arith.negf %175 : vector<8x32xf32>
    %177 = math.exp %176 : vector<8x32xf32>
    %cst_109 = arith.constant 1.000000e+00 : f32
    %178 = vector.broadcast %cst_109 : f32 to vector<8x32xf32>
    %179 = arith.addf %178, %177 : vector<8x32xf32>
    %180 = arith.divf %178, %179 : vector<8x32xf32>
    %181 = arith.mulf %180, %1 : vector<8x32xf32>
    %cst_110 = arith.constant 1.000000e+00 : f32
    %182 = vector.broadcast %cst_110 : f32 to vector<8x32xf32>
    %183 = arith.subf %182, %180 : vector<8x32xf32>
    %184 = arith.mulf %183, %167 : vector<8x32xf32>
    %185 = arith.addf %181, %184 : vector<8x32xf32>
    %cst_111 = arith.constant dense<0.000000e+00> : vector<8xf32>
    %186 = vector.multi_reduction <add>, %185, %cst_111 [1] : vector<8x32xf32> to vector<8xf32>
    %187 = vector.shape_cast %186 : vector<8xf32> to vector<8x1xf32>
    %cst_112 = arith.constant 3.200000e+01 : f32
    %188 = vector.broadcast %cst_112 : f32 to vector<8x1xf32>
    %189 = arith.divf %187, %188 : vector<8x1xf32>
    %190 = vector.broadcast %189 : vector<8x1xf32> to vector<8x32xf32>
    %191 = arith.subf %185, %190 : vector<8x32xf32>
    %192 = arith.mulf %191, %191 : vector<8x32xf32>
    %cst_113 = arith.constant dense<0.000000e+00> : vector<8xf32>
    %193 = vector.multi_reduction <add>, %192, %cst_113 [1] : vector<8x32xf32> to vector<8xf32>
    %194 = vector.shape_cast %193 : vector<8xf32> to vector<8x1xf32>
    %cst_114 = arith.constant 3.200000e+01 : f32
    %195 = vector.broadcast %cst_114 : f32 to vector<8x1xf32>
    %196 = arith.divf %194, %195 : vector<8x1xf32>
    %197 = vector.broadcast %189 : vector<8x1xf32> to vector<8x32xf32>
    %198 = arith.subf %185, %197 : vector<8x32xf32>
    %cst_115 = arith.constant 9.99999974E-6 : f32
    %199 = vector.broadcast %cst_115 : f32 to vector<8x1xf32>
    %200 = arith.addf %196, %199 : vector<8x1xf32>
    %201 = math.rsqrt %200 : vector<8x1xf32>
    %202 = vector.broadcast %201 : vector<8x1xf32> to vector<8x32xf32>
    %203 = arith.mulf %198, %202 : vector<8x32xf32>
    %c0_116 = arith.constant 0 : index
    %c0_117 = arith.constant 0 : index
    %204 = vector.load %arg12[%c0_116, %c0_117] : memref<1x32xf32, #tpu.memory_space<vmem>>, vector<1x32xf32>
    %205 = vector.broadcast %204 : vector<1x32xf32> to vector<8x32xf32>
    %206 = arith.mulf %203, %205 : vector<8x32xf32>
    %c0_118 = arith.constant 0 : index
    %c0_119 = arith.constant 0 : index
    %207 = vector.load %arg13[%c0_118, %c0_119] : memref<1x32xf32, #tpu.memory_space<vmem>>, vector<1x32xf32>
    %208 = vector.broadcast %207 : vector<1x32xf32> to vector<8x32xf32>
    %209 = arith.addf %206, %208 : vector<8x32xf32>
    %c0_120 = arith.constant 0 : index
    %c0_121 = arith.constant 0 : index
    %c0_122 = arith.constant 0 : index
    %210 = vector.load %arg14[%c0_120, %c0_121, %c0_122] : memref<1x8x32xf32, #tpu.memory_space<vmem>>, vector<1x8x32xf32>
    %211 = vector.shape_cast %210 : vector<1x8x32xf32> to vector<8x32xf32>
    %212 = vector.shape_cast %209 : vector<8x32xf32> to vector<1x8x32xf32>
    tpu.vector_store %arg14[%c0_120, %c0_121, %c0_122], %212 {strides = array<i32>} : memref<1x8x32xf32, #tpu.memory_space<vmem>>, vector<1x8x32xf32>,
    return
  }
  func.func @transform_0(%arg0: i32) -> (i32, i32, i32) {
    %c0_i32 = arith.constant 0 : i32
    %c0_i32_0 = arith.constant 0 : i32
    %c0_i32_1 = arith.constant 0 : i32
    return %arg0, %c0_i32, %c0_i32_0 : i32, i32, i32
  }
  func.func @transform_1(%arg0: i32) -> (i32, i32, i32) {
    %c0_i32 = arith.constant 0 : i32
    %c0_i32_0 = arith.constant 0 : i32
    %c0_i32_1 = arith.constant 0 : i32
    return %arg0, %c0_i32, %c0_i32_0 : i32, i32, i32
  }
  func.func @transform_2(%arg0: i32) -> (i32, i32) {
    %c0_i32 = arith.constant 0 : i32
    %c0_i32_0 = arith.constant 0 : i32
    %c0_i32_1 = arith.constant 0 : i32
    return %c0_i32, %c0_i32_0 : i32, i32
  }
  func.func @transform_3(%arg0: i32) -> (i32, i32, i32) {
    %c0_i32 = arith.constant 0 : i32
    %c0_i32_0 = arith.constant 0 : i32
    %c0_i32_1 = arith.constant 0 : i32
    return %arg0, %c0_i32, %c0_i32_0 : i32, i32, i32
  }
  func.func @transform_4(%arg0: i32) -> (i32, i32, i32) {
    %c0_i32 = arith.constant 0 : i32
    %c0_i32_0 = arith.constant 0 : i32
    %c0_i32_1 = arith.constant 0 : i32
    %c0_i32_2 = arith.constant 0 : i32
    return %c0_i32, %c0_i32_0, %c0_i32_1 : i32, i32, i32
  }
  func.func @transform_5(%arg0: i32) -> (i32, i32, i32) {
    %c0_i32 = arith.constant 0 : i32
    %c0_i32_0 = arith.constant 0 : i32
    %c0_i32_1 = arith.constant 0 : i32
    %c0_i32_2 = arith.constant 0 : i32
    return %c0_i32, %c0_i32_0, %c0_i32_1 : i32, i32, i32
  }
  func.func @transform_6(%arg0: i32) -> (i32, i32, i32) {
    %c0_i32 = arith.constant 0 : i32
    %c0_i32_0 = arith.constant 0 : i32
    %c0_i32_1 = arith.constant 0 : i32
    %c0_i32_2 = arith.constant 0 : i32
    return %c0_i32, %c0_i32_0, %c0_i32_1 : i32, i32, i32
  }
  func.func @transform_7(%arg0: i32) -> (i32, i32, i32) {
    %c0_i32 = arith.constant 0 : i32
    %c0_i32_0 = arith.constant 0 : i32
    %c0_i32_1 = arith.constant 0 : i32
    %c0_i32_2 = arith.constant 0 : i32
    return %c0_i32, %c0_i32_0, %c0_i32_1 : i32, i32, i32
  }
  func.func @transform_8(%arg0: i32) -> (i32, i32) {
    %c0_i32 = arith.constant 0 : i32
    %c0_i32_0 = arith.constant 0 : i32
    %c0_i32_1 = arith.constant 0 : i32
    return %c0_i32, %c0_i32_0 : i32, i32
  }
  func.func @transform_9(%arg0: i32) -> (i32, i32) {
    %c0_i32 = arith.constant 0 : i32
    %c0_i32_0 = arith.constant 0 : i32
    %c0_i32_1 = arith.constant 0 : i32
    return %c0_i32, %c0_i32_0 : i32, i32
  }
  func.func @transform_10(%arg0: i32) -> (i32, i32) {
    %c0_i32 = arith.constant 0 : i32
    %c0_i32_0 = arith.constant 0 : i32
    %c0_i32_1 = arith.constant 0 : i32
    return %c0_i32, %c0_i32_0 : i32, i32
  }
  func.func @transform_11(%arg0: i32) -> (i32, i32) {
    %c0_i32 = arith.constant 0 : i32
    %c0_i32_0 = arith.constant 0 : i32
    %c0_i32_1 = arith.constant 0 : i32
    return %c0_i32, %c0_i32_0 : i32, i32
  }
  func.func @transform_12(%arg0: i32) -> (i32, i32) {
    %c0_i32 = arith.constant 0 : i32
    %c0_i32_0 = arith.constant 0 : i32
    %c0_i32_1 = arith.constant 0 : i32
    return %c0_i32, %c0_i32_0 : i32, i32
  }
  func.func @transform_13(%arg0: i32) -> (i32, i32, i32) {
    %c0_i32 = arith.constant 0 : i32
    %c0_i32_0 = arith.constant 0 : i32
    %c0_i32_1 = arith.constant 0 : i32
    return %arg0, %c0_i32, %c0_i32_0 : i32, i32, i32
  }
}

</mosaic_0001>

<bundles_post_ra>
// kernel: tpu_custom_call.1
= control target key start
LH: loop header
LB: loop body
LE: loop exit
PB: predicated region body
PF: predicated region fallthrough
CT: control target
= control target key end

     0   :  { %s5185_s0 = inlined_call_operand.vmem [shape: f32[2,8,32], index: 0, kind: input, shape index: {}]   ;;  %s5186_s1 = inlined_call_operand.vmem [shape: f32[2,8,32], index: 1, kind: input, shape index: {}]   ;;  %s5187_s2 = inlined_call_operand.vmem [shape: f32[13,8], index: 2, kind: input, shape index: {}]   ;;  %s5188_s3 = inlined_call_operand.vmem [shape: s8[2,8,8], index: 3, kind: input, shape index: {}]   ;;  %s5189_s4 = inlined_call_operand.vmem [shape: f32[4,32,8], index: 4, kind: input, shape index: {}]   ;;  %s5190_s5 = inlined_call_operand.vmem [shape: f32[4,32,8], index: 5, kind: input, shape index: {}]   ;;  %s5191_s6 = inlined_call_operand.vmem [shape: f32[4,32,8], index: 6, kind: input, shape index: {}]   ;;  %s5192_s7 = inlined_call_operand.vmem [shape: f32[4,8,32], index: 7, kind: input, shape index: {}]   ;;  %s5193_s8 = inlined_call_operand.vmem [shape: f32[32,32], index: 8, kind: input, shape index: {}]   ;;  %s5194_s9 = inlined_call_operand.vmem [shape: f32[32,32], index: 9, kind: input, shape index: {}]   ;;  %s5195_s10 = inlined_call_operand.vmem [shape: f32[1,32], index: 10, kind: input, shape index: {}]   ;;  %s5196_s11 = inlined_call_operand.vmem [shape: f32[1,32], index: 11, kind: input, shape index: {}]   ;;  %s5197_s12 = inlined_call_operand.vmem [shape: f32[1,32], index: 12, kind: input, shape index: {}]   ;;  %s5198_s13 = inlined_call_operand.hbm [shape: f32[2,8,32], index: 13, kind: output, shape index: {}]  }
   0x1   :  { %5199 = sst [smem:[#allocation6_spill]] %s5185_s0 }
   0x2   :  { %5200 = sst [smem:[#allocation7_spill]] %s5186_s1 }
   0x3   :  { %5201 = sst [smem:[#allocation8_spill]] %s5187_s2 }
   0x4   :  { %18 = vsyncpa [#allocation3], 0 }
   0x5   :  { %20 = vsyncpa [#allocation3 + $0x1], 0  ;;  %s4450_s25 = smov 0   ;;  %s4452_s26 = smov 0  }
   0x6   :  { %s4454_s27 = smov 0   ;;  %s4456_s28 = smov 0  }
   0x7 LB: > { %s4471_s29 = sadd.s32 4294967295, %s4373_s28   ;;  %s3678_s30 = sadd.s32 4294967294, %s4373_s28   ;;  %s4373_s28 = sphi %s4456_s28, %s5214_s28   ;;  %s4369_s27 = sphi %s4454_s27, %s5213_s27   ;;  %s4365_s26 = sphi %s4452_s26, %s5212_s26   ;;  %s4361_s25 = sphi %s4450_s25, %s5211_s25  }
   0x8   : > { %s4475_s14 = sadd.s32 1, %s4373_s28   ;;  %s321_s15 = sadd.s32 1, %s4369_s27 }
   0x9   : > { %s318_s16 = ssub.s32 %s4373_s28, %s4475_s14  ;;  %p331_p0 = scmp.ne.s32.totalorder %s4369_s27, %s4365_s26 }
   0xa   : > { %p319_p1 = scmp.eq.s32.totalorder %s318_s16, 0  ;;  %p332_p2 = scmp.eq.s32.totalorder %s4471_s29, 1 }
   0xb   : > { %p337_p3 = scmp.ne.s32.totalorder %s4365_s26, %s4361_s25  ;;  %p338_p4 = scmp.eq.s32.totalorder %s3678_s30, 1 }
   0xc   : > { %s4486_s17 = scalar_select %p319_p1, %s4369_s27, %s321_s15  }
   0xd   : > { %p4488_p5 = por %p332_p2, %p331_p0  ;;  %p4492_p6 = por %p338_p4, %p337_p3 }
   0xe   : > { %5202 = sst [smem:[#allocation5_spill]] %s4486_s17  ;;  %p3681_p7 = scmp.ge.s32.totalorder %s4373_s28, 1 }
   0xf   : > { %p407_p8 = scmp.lt.s32.totalorder %s4373_s28, 3 }
  0x11   : > { %p408_p9 = pnand %p3681_p7, %p407_p8 }
  0x12   : > { %v553_v0 = vld [vmem:[%s5189_s4] sm:$0xff] (!%p408_p9)  ;;  %v554_v1 = vld [vmem:[%s5189_s4 + $0x8] sm:$0xff] (!%p408_p9)  ;;  %v4375_v3 = vmov (!%p408_p9), 0.0|0.0   ;;  %v555_v6 = vld [vmem:[%s5189_s4 + $0x10] sm:$0xff] (!%p408_p9)  ;;  %p458_p10 = scmp.lt.s32.totalorder (!%p408_p9), %s4471_s29, 1  ;;  %vm4376_vm0 = vmmov (!%p408_p9), 0   ;;  %v478_v25 = vlaneseq (!%p408_p9) }
  0x13   : > { %411 = sbr.rel (%p408_p9) target bundleno = 4634 (0x121a), region = 72  ;;  %v632_v2 = vld [vmem:[%s5190_s5] sm:$0xff] (!%p408_p9)  ;;  %4138 = vmatprep.subr.bf16.mxu0 (!%p408_p9), %v4375_v3  ;;  %v4139_v4 = vpack.c.bf16 (!%p408_p9), %v554_v1, %v553_v0  ;;  %4144 = vmatprep.subr.bf16.mxu1 (!%p408_p9), %v4375_v3  ;;  %v633_v5 = vld [vmem:[%s5190_s5 + $0x8] sm:$0xff] (!%p408_p9)  ;;  %v556_v7 = vld [vmem:[%s5189_s4 + $0x18] sm:$0xff] (!%p408_p9)  ;;  %v4377_v9 = vmov (!%p408_p9), 0.0   ;;  %s5205_s0 = sld [smem:[#allocation6_spill]] (!%p408_p9) }
  0x14   : > { %v4145_v8 = vpack.c.bf16 (!%p408_p9), %v633_v5, %v632_v2  ;;  %3904 = vmatprep.mubr.msk.f32.mxu0 (!%p408_p9), %vm4376_vm0, %v4377_v9  ;;  %v634_v10 = vld [vmem:[%s5190_s5 + $0x10] sm:$0xff] (!%p408_p9)  ;;  %v635_v11 = vld [vmem:[%s5190_s5 + $0x18] sm:$0xff] (!%p408_p9)  ;;  %3915 = vmatprep.mubr.msk.f32.mxu1 (!%p408_p9), %vm4376_vm0, %v4377_v9  ;;  %v4142_v12 = vpack.c.bf16 (!%p408_p9), %v556_v7, %v555_v6  ;;  %s5206_s1 = sld [smem:[#allocation7_spill]] (!%p408_p9)  ;;  %vm557_vm1 = vcmask (!%p408_p9), 261120   ;;  %s5207_s2 = sld [smem:[#allocation8_spill]] (!%p408_p9)  ;;  %vm783_vm2 = vcmask (!%p408_p9), 64512  }
  0x15   : > { %4140 = vmatpush3.bf16.msra.mxu0 (!%p408_p9), %v4139_v4  ;;  %v4148_v13 = vpack.c.bf16 (!%p408_p9), %v635_v11, %v634_v10  ;;  %vm4571_vm3 = vmpackc.low (!%p408_p9), %vm783_vm2, %vm783_vm2  ;;  %v479_v26 = vshrl.u32 (!%p408_p9), %v478_v25, 7  ;;  %v4587_v27 = vand.u32 (!%p408_p9), 127, %v478_v25  ;;  %v4378_v30 = vmov (!%p408_p9), 1966171168  }
  0x16   : > { %4141 = vmatprep.subr.bf16.mxu0 (!%p408_p9), %v4375_v3  ;;  %4146 = vmatpush3.bf16.msra.mxu1 (!%p408_p9), %v4145_v8  ;;  %v866_v31 = vunpack.c.l.s4 (!%p408_p9), %v4378_v30  ;;  %vm961_vm9 = vcmask (!%p408_p9), 105472  }
  0x17   : > { %4147 = vmatprep.subr.bf16.mxu1 (!%p408_p9), %v4375_v3  ;;  %v4590_v28 = vsub.s32 (!%p408_p9), %v4587_v27, %v479_v26  ;;  %v3686_v29 = vadd.s32 (!%p408_p9), 4294967295, %v479_v26  ;;  %vm505_vm4 = vcmp.lt.s32.totalorder (!%p408_p9), %v479_v26, 6  ;;  %v3687_v34 = vadd.s32 (!%p408_p9), 4294967294, %v479_v26 }
  0x18   : > { %v506_v32 = vsel (!%p408_p9), %vm505_vm4, %v479_v26, 6  ;;  %v867_v33 = vunpack.c.0.s8 (!%p408_p9), %v866_v31  ;;  %v3688_v37 = vadd.s32 (!%p408_p9), 4294967293, %v479_v26  ;;  %v3689_v38 = vadd.s32 (!%p408_p9), 4294967292, %v479_v26 }
  0x19   : > { %4143 = vmatpush3.bf16.msra.mxu0 (!%p408_p9), %v4142_v12  ;;  %vm507_vm5 = vcmp.lt.s32.totalorder (!%p408_p9), %v3686_v29, 6  ;;  %v521_v35 = vadd.s32 (!%p408_p9), 6, %v506_v32  ;;  %v3691_v39 = vadd.s32 (!%p408_p9), 4294967290, %v479_v26  ;;  %v523_v41 = vadd.s32 (!%p408_p9), 6, %v3687_v34 }
  0x1a   : > { %s4530_s20 = scalar_select %p458_p10, %s4471_s29, 1  ;;  %4149 = vmatpush3.bf16.msra.mxu1 %v4148_v13  ;;  %4150 = vmatprep.subr.bf16.mxu0 %v4375_v3  ;;  %v476_v16 = vld [vmem:[%s5207_s2] sm:$0xff]  ;;  %v477_v17 = vld [vmem:[%s5207_s2 + $0x8] sm:$0x1f]  ;;  %v508_v36 = vsel %vm507_vm5, %v3686_v29, 6  ;;  %v4592_v40 = vsub.s32 %v867_v33, %v479_v26  ;;  %v524_v44 = vadd.s32 6, %v3688_v37 }
  0x1b   : > { %4156 = vmatprep.subr.bf16.mxu1 %v4375_v3  ;;  %v4567_v18 = vpack.c.bf16 %v477_v17, %v476_v16  ;;  %v522_v42 = vadd.s32 6, %v508_v36  ;;  %vm529_vm6 = vcmp.eq.s32.totalorder %v521_v35, %v4587_v27  ;;  %v525_v45 = vadd.s32 6, %v3689_v38 }
  0x1c   : > { %s3683_s21 = sshll.u32 %s4530_s20, 3  ;;  %vm501_vm7 = vcmp.gt.s32.totalorder %v3691_v39, 4294967290  ;;  %v3692_v46 = vadd.s32 4294967289, %v479_v26  ;;  %v4596_v49 = vsub.s32 0, %v479_v26  ;;  %vm531_vm8 = vcmp.eq.s32.totalorder %v523_v41, %v4587_v27  ;;  %s3685_s17 = sshll.u32 %s4530_s20, 1 }
  0x1d   : > { %s4538_s24 = scalar_lea.vmem %s5205_s0, %s3683_s21  ;;  %s4543_s16 = scalar_lea.vmem %s5206_s1, %s3683_s21  ;;  %v4600_v51 = vsel %vm529_vm6, 1.0, %v4377_v9  ;;  %vm530_vm10 = vcmp.eq.s32.totalorder %v522_v42, %v4587_v27  ;;  %v3690_v52 = vadd.s32 4294967291, %v479_v26  ;;  %v502_v56 = vsel %vm501_vm7, %v3691_v39, 4294967290 }
  0x1e   : > { %v4546_v14 = vld [vmem:[%s4538_s24] sm:$0xff]  ;;  %v4608_v58 = vsel %vm531_vm8, 1.0, %v4377_v9  ;;  %vm532_vm11 = vcmp.eq.s32.totalorder %v524_v44, %v4587_v27  ;;  %vm533_vm12 = vcmp.eq.s32.totalorder %v525_v45, %v4587_v27  ;;  %vm503_vm13 = vcmp.gt.s32.totalorder %v3692_v46, 4294967290  ;;  %s469_s22 = scalar_lea.vmem %s5188_s3, %s3685_s17  ;;  %s3787_s0 = sshll.u32 %s4471_s29, 7 }
  0x1f   : > { %v4549_v15 = vld [vmem:[%s4543_s16] sm:$0xff]  ;;  %3905 = vmatmul.mubr.msk.f32.vlgmr.msra.gmra.mrb[0].mxu0 %vm557_vm1, %v4546_v14  ;;  %v4618_v1 = vsel %vm530_vm10, 1.0, %v4377_v9  ;;  %v526_v2 = vadd.s32 6, %v3690_v52  ;;  %v527_v4 = vadd.s32 6, %v502_v56  ;;  %v504_v8 = vsel %vm503_vm13, %v3692_v46, 4294967290  ;;  %v712_v52 = vld [vmem:[%s5191_s6 + $0x18] sm:$0xff]  ;;  %s5142_s30 = scalar_lea.hbm %s5198_s13, %s3787_s0 }
  0x20   : > { %3916 = vmatmul.mubr.msk.f32.vlgmr.msra.gmra.mrb[0].mxu1 %vm557_vm1, %v4549_v15  ;;  %3926 = vmatprep.mubr.msk.f32.mxu0 %vm4376_vm0, %v4377_v9  ;;  %v4626_v11 = vsel %vm532_vm11, 1.0, %v4377_v9  ;;  %v709_v46 = vld [vmem:[%s5191_s6] sm:$0xff]  ;;  %vm1026_vm5 = vcmask 1041409   ;;  %vm1028_vm6 = vcmask 1042434   ;;  %vm1030_vm7 = vcmask 1043459   ;;  %s4379_s29 = smov [#allocation2]  }
  0x21   : > { %3933 = vmatprep.mubr.msk.f32.mxu1 %vm4376_vm0, %v4377_v9  ;;  %vm534_vm14 = vcmp.eq.s32.totalorder %v526_v2, %v4587_v27  ;;  %vm535_vm15 = vcmp.eq.s32.totalorder %v527_v4, %v4587_v27  ;;  %vm1032_vm8 = vcmask 1044484   ;;  %vm1034_vm10 = vcmask 1045509  }
  0x22   : > { %v4647_v33 = vsel %vm534_vm14, 1.0, %v4377_v9  ;;  %v4651_v35 = vsel %vm535_vm15, 1.0, %v4377_v9  ;;  %vm1036_vm11 = vcmask 1046534  }
  0x23   : > { %4159 = vmatpush3.bf16.xpose.msk.msra.mxu1 %vm4571_vm3, %v4567_v18 }
  0x24   : > { %3936 = vmatprep.subr.mxu1 %v4377_v9 }
  0xf2   : > { %v627_v20 = vpop.f32.mrb[0].mxu0 }
  0xf3   : > { %v631_v21 = vmul.f32 0.35355338, %v627_v20  ;;  %v3906_v22 = vpop.f32.mrb[1].mxu0  ;;  %v705_v23 = vpop.f32.mrb[0].mxu1 }
  0xf4   : > { %v3917_v24 = vpop.f32.mrb[1].mxu1 }
  0xf5   : > { %3934 = vmatmul.mubr.msk.f32.vlgmr.msra.gmra.mrb[2].mxu1 %vm783_vm2, %v631_v21  ;;  %v528_v24 = vadd.s32 6, %v504_v8 }
  0xf6   : > { %3937 = vmatpush3.xpose.msk.msra.mxu1 %vm783_vm2, %v705_v23  ;;  %3938 = vmatprep.mubr.msk.f32.mxu1 %vm4376_vm0, %v4377_v9  ;;  %v4637_v23 = vsel %vm533_vm12, 1.0, %v4377_v9  ;;  %vm1038_vm12 = vcmask 1047559  }
  0xf7   : > { %3941 = vmatprep.subr.mxu1 %v4377_v9  ;;  %vm536_vm4 = vcmp.eq.s32.totalorder %v528_v24, %v4587_v27 }
  0xf8   : > { %v4660_v42 = vsel %vm536_vm4, 1.0, %v4377_v9 }
  0xf9   : > { %3939 = vmatmul.mubr.msk.f32.vlgmr.msra.gmra.mrb[4].mxu1 %vm783_vm2, %v631_v21 }
  0xfa   : > { %3943 = vmatprep.mubr.msk.f32.mxu1 %vm4376_vm0, %v4377_v9 }
 0x1c8   : > { %v859_v43 = vpop.f32.mrb[2].mxu1 }
 0x1c9   : > { %v864_v47 = vcombine.high %v859_v43, %v859_v43  ;;  %v871_v48 = vrot.slane %v859_v43, %v4592_v40  ;;  %v3935_v50 = vpop.f32.mrb[3].mxu1 }
 0x1cb   : > { %v878_v53 = vrot.slane %v864_v47, %v4592_v40  ;;  %v879_v54 = vcombine.high %v871_v48, %v871_v48  ;;  %v887_v55 = vrot.slane %v871_v48, %v4592_v40  ;;  %v710_v47 = vld [vmem:[%s5191_s6 + $0x8] sm:$0xff]  ;;  %v711_v48 = vld [vmem:[%s5191_s6 + $0x10] sm:$0xff] }
 0x1cc   : > { %v4605_v57 = vpop.f32.mrb[4].mxu1  ;;  %v4151_v50 = vpack.c.bf16 %v710_v47, %v709_v46 }
 0x1cd   : > { %v880_v59 = vcombine.high %v878_v53, %v878_v53  ;;  %v894_v60 = vrot.slane %v878_v53, %v4592_v40  ;;  %v901_v61 = vrot.slane %v879_v54, %v4592_v40  ;;  %v3940_v62 = vpop.f32.mrb[5].mxu1  ;;  %v916_v63 = vrot.slane %v887_v55, %v4596_v49  ;;  %v3710_v54 = vld [vmem:[%s5189_s4 + $0x20] sm:$0xff] }
 0x1ce   : > { %v909_v0 = vcombine.high %v887_v55, %v887_v55  ;;  %4152 = vmatpush3.bf16.msra.mxu0 %v4151_v50  ;;  %v4154_v53 = vpack.c.bf16 %v712_v52, %v711_v48  ;;  %v3711_v55 = vld [vmem:[%s5189_s4 + $0x28] sm:$0xff]  ;;  %v3720_v52 = vld [vmem:[%s5191_s6 + $0x20] sm:$0xff] }
 0x1cf   : > { %v953_v5 = vmul.f32 %v4600_v51, %v916_v63  ;;  %v920_v6 = vrot.slane %v901_v61, %v4596_v49  ;;  %v911_v7 = vcombine.high %v901_v61, %v901_v61  ;;  %v932_v12 = vrot.slane %v894_v60, %v4596_v49  ;;  %4153 = vmatprep.subr.bf16.mxu0 %v4375_v3 }
 0x1d0   : > { %v924_v10 = vrot.slane %v909_v0, %v4596_v49  ;;  %v908_v13 = vrot.slane %v880_v59, %v4592_v40  ;;  %v910_v21 = vcombine.high %v894_v60, %v894_v60  ;;  %v4161_v56 = vpack.c.bf16 %v3711_v55, %v3710_v54  ;;  %v3712_v59 = vld [vmem:[%s5189_s4 + $0x30] sm:$0xff]  ;;  %v3713_v60 = vld [vmem:[%s5189_s4 + $0x38] sm:$0xff] }
 0x1d1   : > { %v962_v16 = vsel %vm961_vm9, %v953_v5, 0.0  ;;  %v954_v17 = vmul.f32 %v4618_v1, %v920_v6  ;;  %v928_v20 = vrot.slane %v911_v7, %v4596_v49  ;;  %v957_v32 = vmul.f32 %v4637_v23, %v932_v12  ;;  %v472_v6 = vld [vmem:[%s469_s22] sm:$0x3]  ;;  %v3722_v54 = vld [vmem:[%s5191_s6 + $0x30] sm:$0xff] }
 0x1d2   : > { %963 = vadd.xlane.f32.xlu0 %v962_v16  ;;  %v955_v22 = vmul.f32 %v4608_v58, %v924_v10  ;;  %v936_v29 = vrot.slane %v908_v13, %v4596_v49  ;;  %v912_v30 = vcombine.high %v908_v13, %v908_v13  ;;  %v940_v34 = vrot.slane %v910_v21, %v4596_v49 }
 0x1d3   : > { %v956_v26 = vmul.f32 %v4626_v11, %v928_v20  ;;  %v965_v31 = vsel %vm961_vm9, %v954_v17, 0.0  ;;  %v974_v39 = vsel %vm961_vm9, %v957_v32, 0.0  ;;  %4155 = vmatpush3.bf16.msra.mxu0 %v4154_v53  ;;  %v4164_v61 = vpack.c.bf16 %v3713_v60, %v3712_v59  ;;  %v3721_v53 = vld [vmem:[%s5191_s6 + $0x28] sm:$0xff] }
 0x1d4   : > { %v968_v25 = vsel %vm961_vm9, %v955_v22, 0.0  ;;  %v958_v37 = vmul.f32 %v4647_v33, %v936_v29  ;;  %v944_v38 = vrot.slane %v912_v30, %v4596_v49  ;;  %v959_v41 = vmul.f32 %v4651_v35, %v940_v34  ;;  %4160 = vmatprep.subr.bf16.mxu0 %v4375_v3 }
 0x1d5   : > { %969 = vadd.xlane.f32.xlu1 %v968_v25  ;;  %v971_v36 = vsel %vm961_vm9, %v956_v26, 0.0  ;;  %v473_v17 = vunpack.c.0.s8 %v472_v6  ;;  %v4173_v55 = vpack.c.bf16 %v3721_v53, %v3720_v52 }
 0x1d6   : > { %966 = vadd.xlane.f32.xlu0 %v965_v31  ;;  %v977_v43 = vsel %vm961_vm9, %v958_v37, 0.0  ;;  %v960_v44 = vmul.f32 %v4660_v42, %v944_v38  ;;  %v980_v27 = vsel %vm961_vm9, %v959_v41, 0.0  ;;  %3927 = vmatmul.mubr.msk.f32.vlgmr.msra.gmra.mrb[2].mxu0 %vm557_vm1, %v4549_v15 }
 0x1d7   : > { %4162 = vmatpush3.bf16.msra.mxu0 %v4161_v56  ;;  %3954 = vmatprep.mubr.msk.f32.mxu0 %vm4376_vm0, %v4377_v9  ;;  %v474_v29 = vcvt.s32.f32 %v473_v17  ;;  %v3723_v56 = vld [vmem:[%s5191_s6 + $0x38] sm:$0xff] }
 0x1d8   : > { %v983_v45 = vsel %vm961_vm9, %v960_v44, 0.0  ;;  %4163 = vmatprep.subr.bf16.mxu0 %v4375_v3  ;;  %v4176_v59 = vpack.c.bf16 %v3723_v56, %v3722_v54 }
 0x1d9   : > { %972 = vadd.xlane.f32.xlu1 %v971_v36  ;;  %v4720_v36 = vmul.f32 -1e+30, %v474_v29 }
 0x1da   : > { %975 = vadd.xlane.f32.xlu0 %v974_v39 }
 0x1db   : > { %4165 = vmatpush3.bf16.msra.mxu0 %v4164_v61  ;;  %v3715_v61 = vld [vmem:[%s5190_s5 + $0x20] sm:$0xff] }
 0x1dc   : > { %4172 = vmatprep.subr.bf16.mxu0 %v4375_v3 }
 0x1dd   : > { %978 = vadd.xlane.f32.xlu1 %v977_v43 }
 0x1de   : > { %981 = vadd.xlane.f32.xlu0 %v980_v27  ;;  %3955 = vmatmul.mubr.msk.f32.vlgmr.msra.gmra.mrb[4].mxu0 %vm557_vm1, %v4546_v14 }
 0x1df   : > { %3976 = vmatprep.mubr.msk.f32.mxu0 %vm4376_vm0, %v4377_v9  ;;  %4174 = vmatpush3.bf16.msra.mxu0 %v4173_v55 }
 0x1e0   : > { %4175 = vmatprep.subr.bf16.mxu0 %v4375_v3 }
 0x1e1   : > { %984 = vadd.xlane.f32.xlu1 %v983_v45 }
 0x1e3   : > { %4177 = vmatpush3.bf16.msra.mxu0 %v4176_v59 }
 0x1e4   : > { %3986 = vmatprep.subr.mxu0 %v4377_v9 }
 0x1e6   : > { %3977 = vmatmul.mubr.msk.f32.vlgmr.msra.gmra.mrb[6].mxu0 %vm557_vm1, %v4549_v15 }
 0x1e7   : > { %3988 = vmatprep.mubr.msk.f32.mxu0 %vm4376_vm0, %v4377_v9 }
 0x25f   : > { %v964_v62 = vpop.xlane.xlu0 %963 }
 0x260   : > { %v997_v2 = vrot.slane %v964_v62, %v4590_v28  ;;  %v3716_v62 = vld [vmem:[%s5190_s5 + $0x28] sm:$0xff] }
 0x262   : > { %v970_v63 = vpop.xlane.xlu1 %969 }
 0x263   : > { %v967_v0 = vpop.xlane.xlu0 %966  ;;  %v1005_v5 = vrot.slane %v970_v63, %v4590_v28 }
 0x264   : > { %v1001_v4 = vrot.slane %v967_v0, %v4590_v28  ;;  %v4167_v0 = vpack.c.bf16 %v3716_v62, %v3715_v61 }
 0x266   : > { %v1027_v7 = vsel %vm1026_vm5, %v1001_v4, %v997_v2  ;;  %v973_v8 = vpop.xlane.xlu1 %972  ;;  %v3717_v4 = vld [vmem:[%s5190_s5 + $0x30] sm:$0xff] }
 0x267   : > { %v1029_v10 = vsel %vm1028_vm6, %v1005_v5, %v1027_v7  ;;  %v1009_v12 = vrot.slane %v973_v8, %v4590_v28  ;;  %v976_v13 = vpop.xlane.xlu0 %975  ;;  %v3718_v5 = vld [vmem:[%s5190_s5 + $0x38] sm:$0xff] }
 0x268   : > { %v1013_v16 = vrot.slane %v976_v13, %v4590_v28  ;;  %v4170_v6 = vpack.c.bf16 %v3718_v5, %v3717_v4 }
 0x269   : > { %v1031_v20 = vsel %vm1030_vm7, %v1009_v12, %v1029_v10 }
 0x26a   : > { %v1033_v21 = vsel %vm1032_vm8, %v1013_v16, %v1031_v20  ;;  %v979_v22 = vpop.xlane.xlu1 %978 }
 0x26b   : > { %v1017_v24 = vrot.slane %v979_v22, %v4590_v28  ;;  %v982_v25 = vpop.xlane.xlu0 %981 }
 0x26c   : > { %v1021_v26 = vrot.slane %v982_v25, %v4590_v28 }
 0x26d   : > { %v1035_v30 = vsel %vm1034_vm10, %v1017_v24, %v1033_v21 }
 0x26e   : > { %v1037_v31 = vsel %vm1036_vm11, %v1021_v26, %v1035_v30  ;;  %v985_v32 = vpop.xlane.xlu1 %984 }
 0x26f   : > { %v1025_v34 = vrot.slane %v985_v32, %v4590_v28 }
 0x271   : > { %v1039_v37 = vsel %vm1038_vm12, %v1025_v34, %v1037_v31 }
 0x272   : > { %v1111_v38 = vadd.f32 %v4605_v57, %v1039_v37 }
 0x274   : > { %v1114_v39 = vadd.f32 %v1111_v38, %v4720_v36 }
 0x276   : > { %v1115_v41 = vsel %vm783_vm2, %v1114_v39, -inf }
 0x277   : > { %1116 = vmax.xlane.f32.xlu0 %v1115_v41 }
 0x2a9   : > { %v779_v47 = vpop.f32.mrb[2].mxu0 }
 0x2aa   : > { %v3928_v48 = vpop.f32.mrb[3].mxu0  ;;  %3942 = vmatpush3.msra.mxu1 %v779_v47 }
 0x2ab   : > { %4166 = vmatprep.subr.bf16.mxu1 %v4375_v3 }
 0x2b1   : > { %v1271_v50 = vpop.f32.mrb[4].mxu0 }
 0x2b2   : > { %v3956_v57 = vpop.f32.mrb[5].mxu0  ;;  %v1275_v7 = vmul.f32 0.35355338, %v1271_v50 }
 0x2b9   : > { %v1422_v5 = vpop.f32.mrb[6].mxu0 }
 0x304   : > { %v1117_v43 = vpop.xlane.xlu0 %1116 }
 0x305   : > { %v1118_v44 = vsub.f32 %v1114_v39, %v1117_v43 }
 0x307   : > { %v1119_v27 = vmul.f32 1.442695, %v1118_v44 }
 0x309   : > { %4287 = vpow2.f32 %v1119_v27 }
 0x313   : > { %v4288_v45 = vpop.eup %4287 }
 0x314   : > { %v1121_v46 = vsel %vm783_vm2, %v4288_v45, 0.0 }
 0x315   : > { %1122 = vadd.xlane.f32.xlu1 %v1121_v46 }
 0x3a2   : > { %v1123_v60 = vpop.xlane.xlu1 %1122 }
 0x3a3   : > { %4289 = vrcp.f32 %v1123_v60 }
 0x3ad   : > { %v4290_v63 = vpop.eup %4289 }
 0x3ae   : > { %v1125_v2 = vmul.f32 %v4290_v63, %v4288_v45 }
 0x3b0   : > { %3944 = vmatmul.mubr.msk.f32.vlgmr.msra.gmra.mrb[6].mxu1 %vm783_vm2, %v1125_v2 }
 0x3b1   : > { %4168 = vmatpush3.bf16.msra.mxu1 %v4167_v0  ;;  %3965 = vmatprep.mubr.msk.f32.mxu1 %vm4376_vm0, %v4377_v9 }
 0x3b2   : > { %4169 = vmatprep.subr.bf16.mxu1 %v4375_v3 }
 0x3b5   : > { %4171 = vmatpush3.bf16.msra.mxu1 %v4170_v6  ;;  %v3978_v6 = vpop.f32.mrb[7].mxu0 }
 0x3b6   : > { %4178 = vmatprep.subr.bf16.mxu1 %v4375_v3  ;;  %v3745_v6 = vld [vmem:[%s5191_s6 + $0x48] sm:$0xff] }
 0x3b8   : > { %3966 = vmatmul.mubr.msk.f32.vlgmr.msra.gmra.mrb[8].mxu1 %vm557_vm1, %v4549_v15 }
 0x3b9   : > { %3983 = vmatprep.mubr.msk.f32.mxu1 %vm4376_vm0, %v4377_v9 }
 0x3be   : > { %4181 = vmatpush3.bf16.xpose.msk.msra.mxu1 %vm4571_vm3, %v4567_v18 }
 0x3bf   : > { %3991 = vmatprep.subr.mxu1 %v4377_v9 }
 0x3c5   : > { %3984 = vmatmul.mubr.msk.f32.vlgmr.msra.gmra.mrb[10].mxu1 %vm783_vm2, %v1275_v7 }
 0x3c6   : > { %3993 = vmatprep.mubr.msk.f32.mxu1 %vm4376_vm0, %v4377_v9  ;;  %3992 = vmatpush3.msra.mxu1 %v1422_v5  ;;  %v3744_v5 = vld [vmem:[%s5191_s6 + $0x40] sm:$0xff] }
 0x3c7   : > { %4182 = vmatprep.subr.bf16.mxu1 %v4375_v3 }
 0x483   : > { %v4774_v8 = vpop.f32.mrb[6].mxu1 }
 0x484   : > { %v3945_v10 = vpop.f32.mrb[7].mxu1 }
 0x48b   : > { %v1347_v12 = vpop.f32.mrb[8].mxu1 }
 0x48c   : > { %v3967_v13 = vpop.f32.mrb[9].mxu1  ;;  %3987 = vmatpush3.xpose.msk.msra.mxu0 %vm783_vm2, %v1347_v12 }
 0x48d   : > { %3996 = vmatprep.subr.mxu0 %v4377_v9 }
 0x48f   : > { %3989 = vmatmul.mubr.msk.f32.vlgmr.msra.gmra.mrb[8].mxu0 %vm783_vm2, %v1275_v7 }
 0x490   : > { %3998 = vmatprep.mubr.msk.f32.mxu0 %vm4376_vm0, %v4377_v9 }
 0x498   : > { %v1495_v16 = vpop.f32.mrb[10].mxu1 }
 0x499   : > { %v1500_v17 = vcombine.high %v1495_v16, %v1495_v16  ;;  %v1507_v20 = vrot.slane %v1495_v16, %v4592_v40  ;;  %v3985_v21 = vpop.f32.mrb[11].mxu1 }
 0x49b   : > { %v1514_v22 = vrot.slane %v1500_v17, %v4592_v40  ;;  %v1515_v24 = vcombine.high %v1507_v20, %v1507_v20  ;;  %v1523_v25 = vrot.slane %v1507_v20, %v4592_v40 }
 0x49d   : > { %v1516_v26 = vcombine.high %v1514_v22, %v1514_v22  ;;  %v1530_v29 = vrot.slane %v1514_v22, %v4592_v40  ;;  %v1537_v30 = vrot.slane %v1515_v24, %v4592_v40  ;;  %v1545_v31 = vcombine.high %v1523_v25, %v1523_v25 }
 0x49e   : > { %v1552_v32 = vrot.slane %v1523_v25, %v4596_v49 }
 0x49f   : > { %v1556_v34 = vrot.slane %v1537_v30, %v4596_v49  ;;  %v1560_v37 = vrot.slane %v1545_v31, %v4596_v49  ;;  %v1547_v38 = vcombine.high %v1537_v30, %v1537_v30  ;;  %v1568_v41 = vrot.slane %v1530_v29, %v4596_v49 }
 0x4a0   : > { %v1589_v39 = vmul.f32 %v4600_v51, %v1552_v32  ;;  %v1544_v43 = vrot.slane %v1516_v26, %v4592_v40  ;;  %v1546_v44 = vcombine.high %v1530_v29, %v1530_v29 }
 0x4a1   : > { %v1590_v27 = vmul.f32 %v4618_v1, %v1556_v34  ;;  %v1591_v45 = vmul.f32 %v4608_v58, %v1560_v37  ;;  %v1564_v46 = vrot.slane %v1547_v38, %v4596_v49  ;;  %v1593_v54 = vmul.f32 %v4637_v23, %v1568_v41 }
 0x4a2   : > { %v1597_v47 = vsel %vm961_vm9, %v1589_v39, 0.0  ;;  %v1572_v48 = vrot.slane %v1544_v43, %v4596_v49  ;;  %v1548_v50 = vcombine.high %v1544_v43, %v1544_v43  ;;  %v1576_v55 = vrot.slane %v1546_v44, %v4596_v49 }
 0x4a3   : > { %1598 = vadd.xlane.f32.xlu0 %v1597_v47  ;;  %v1600_v57 = vsel %vm961_vm9, %v1590_v27, 0.0  ;;  %v1592_v52 = vmul.f32 %v4626_v11, %v1564_v46  ;;  %v1603_v53 = vsel %vm961_vm9, %v1591_v45, 0.0  ;;  %v1609_v61 = vsel %vm961_vm9, %v1593_v54, 0.0 }
 0x4a4   : > { %1601 = vadd.xlane.f32.xlu1 %v1600_v57  ;;  %v1594_v59 = vmul.f32 %v4647_v33, %v1572_v48  ;;  %v1580_v60 = vrot.slane %v1548_v50, %v4596_v49  ;;  %v1595_v62 = vmul.f32 %v4651_v35, %v1576_v55  ;;  %v3731_v55 = vld [vmem:[%s5192_s7 + $0x8] sm:$0xff] }
 0x4a5   : > { %v1606_v56 = vsel %vm961_vm9, %v1592_v52, 0.0  ;;  %3997 = vmatpush3.msra.mxu0 %v3731_v55 }
 0x4a6   : > { %v1612_v63 = vsel %vm961_vm9, %v1594_v59, 0.0  ;;  %v1596_v0 = vmul.f32 %v4660_v42, %v1580_v60  ;;  %v1615_v2 = vsel %vm961_vm9, %v1595_v62, 0.0  ;;  %4001 = vmatprep.subr.mxu0 %v4377_v9  ;;  %v3734_v59 = vld [vmem:[%s5189_s4 + $0x40] sm:$0xff]  ;;  %v3735_v60 = vld [vmem:[%s5189_s4 + $0x48] sm:$0xff] }
 0x4a7   : > { %1604 = vadd.xlane.f32.xlu0 %v1603_v53  ;;  %v4183_v62 = vpack.c.bf16 %v3735_v60, %v3734_v59 }
 0x4a8   : > { %1607 = vadd.xlane.f32.xlu1 %v1606_v56  ;;  %v1618_v4 = vsel %vm961_vm9, %v1596_v0, 0.0  ;;  %v3736_v0 = vld [vmem:[%s5189_s4 + $0x50] sm:$0xff] }
 0x4ab   : > { %1610 = vadd.xlane.f32.xlu0 %v1609_v61 }
 0x4ac   : > { %1613 = vadd.xlane.f32.xlu1 %v1612_v63 }
 0x4af   : > { %1616 = vadd.xlane.f32.xlu0 %v1615_v2  ;;  %v3737_v2 = vld [vmem:[%s5189_s4 + $0x58] sm:$0xff] }
 0x4b0   : > { %1619 = vadd.xlane.f32.xlu1 %v1618_v4  ;;  %v4186_v4 = vpack.c.bf16 %v3737_v2, %v3736_v0 }
 0x530   : > { %v1599_v7 = vpop.xlane.xlu0 %1598 }
 0x531   : > { %v1602_v10 = vpop.xlane.xlu1 %1601  ;;  %v1632_v12 = vrot.slane %v1599_v7, %v4590_v28  ;;  %v3746_v7 = vld [vmem:[%s5191_s6 + $0x50] sm:$0xff] }
 0x532   : > { %v1636_v13 = vrot.slane %v1602_v10, %v4590_v28  ;;  %v4195_v10 = vpack.c.bf16 %v3745_v6, %v3744_v5 }
 0x534   : > { %v1605_v16 = vpop.xlane.xlu0 %1604  ;;  %v1661_v21 = vsel %vm1026_vm5, %v1636_v13, %v1632_v12  ;;  %v3747_v12 = vld [vmem:[%s5191_s6 + $0x58] sm:$0xff] }
 0x535   : > { %v1640_v17 = vrot.slane %v1605_v16, %v4590_v28  ;;  %v1608_v20 = vpop.xlane.xlu1 %1607  ;;  %v4198_v13 = vpack.c.bf16 %v3747_v12, %v3746_v7  ;;  %v1199_v16 = vld [vmem:[%s5192_s7] sm:$0xff] }
 0x536   : > { %v1644_v22 = vrot.slane %v1608_v20, %v4590_v28 }
 0x537   : > { %v1662_v25 = vsel %vm1028_vm6, %v1640_v17, %v1661_v21  ;;  %v3739_v21 = vld [vmem:[%s5190_s5 + $0x40] sm:$0xff] }
 0x538   : > { %v1611_v24 = vpop.xlane.xlu0 %1610  ;;  %v1663_v30 = vsel %vm1030_vm7, %v1644_v22, %v1662_v25  ;;  %v3740_v22 = vld [vmem:[%s5190_s5 + $0x48] sm:$0xff]  ;;  %v3741_v25 = vld [vmem:[%s5190_s5 + $0x50] sm:$0xff] }
 0x539   : > { %v1648_v26 = vrot.slane %v1611_v24, %v4590_v28  ;;  %v1614_v29 = vpop.xlane.xlu1 %1613  ;;  %v4189_v24 = vpack.c.bf16 %v3740_v22, %v3739_v21 }
 0x53a   : > { %v1652_v31 = vrot.slane %v1614_v29, %v4590_v28 }
 0x53b   : > { %v1664_v34 = vsel %vm1032_vm8, %v1648_v26, %v1663_v30  ;;  %v3742_v26 = vld [vmem:[%s5190_s5 + $0x58] sm:$0xff] }
 0x53c   : > { %v1617_v32 = vpop.xlane.xlu0 %1616  ;;  %v1665_v39 = vsel %vm1034_vm10, %v1652_v31, %v1664_v34  ;;  %v4192_v31 = vpack.c.bf16 %v3742_v26, %v3741_v25 }
 0x53d   : > { %v1656_v37 = vrot.slane %v1617_v32, %v4590_v28  ;;  %v1620_v38 = vpop.xlane.xlu1 %1619 }
 0x53e   : > { %v1660_v41 = vrot.slane %v1620_v38, %v4590_v28 }
 0x53f   : > { %v1666_v43 = vsel %vm1036_vm11, %v1656_v37, %v1665_v39 }
 0x540   : > { %v1667_v44 = vsel %vm1038_vm12, %v1660_v41, %v1666_v43 }
 0x562   : > { %v1738_v27 = vpop.f32.mrb[8].mxu0 }
 0x563   : > { %v1739_v45 = vadd.f32 %v1738_v27, %v1667_v44  ;;  %v3990_v46 = vpop.f32.mrb[9].mxu0 }
 0x565   : > { %v1742_v47 = vadd.f32 %v1739_v45, %v4720_v36 }
 0x567   : > { %v1743_v48 = vsel %vm783_vm2, %v1742_v47, -inf }
 0x568   : > { %1744 = vmax.xlane.f32.xlu0 %v1743_v48 }
 0x5f5   : > { %v1745_v50 = vpop.xlane.xlu0 %1744 }
 0x5f6   : > { %v1746_v57 = vsub.f32 %v1742_v47, %v1745_v50 }
 0x5f8   : > { %v1747_v52 = vmul.f32 1.442695, %v1746_v57 }
 0x5fa   : > { %4291 = vpow2.f32 %v1747_v52 }
 0x604   : > { %v4292_v53 = vpop.eup %4291 }
 0x605   : > { %v1749_v54 = vsel %vm783_vm2, %v4292_v53, 0.0 }
 0x606   : > { %1750 = vadd.xlane.f32.xlu1 %v1749_v54 }
 0x693   : > { %v1751_v56 = vpop.xlane.xlu1 %1750 }
 0x694   : > { %4293 = vrcp.f32 %v1751_v56 }
 0x69e   : > { %v4294_v61 = vpop.eup %4293 }
 0x69f   : > { %v1753_v63 = vmul.f32 %v4294_v61, %v4292_v53 }
 0x6a1   : > { %3994 = vmatmul.mubr.msk.f32.vlgmr.msra.gmra.mrb[12].mxu1 %vm783_vm2, %v1753_v63 }
 0x6a2   : > { %4184 = vmatpush3.bf16.msra.mxu1 %v4183_v62  ;;  %4014 = vmatprep.mubr.msk.f32.mxu1 %vm4376_vm0, %v4377_v9 }
 0x6a3   : > { %4185 = vmatprep.subr.bf16.mxu1 %v4375_v3 }
 0x6a6   : > { %4187 = vmatpush3.bf16.msra.mxu1 %v4186_v4 }
 0x6a7   : > { %4194 = vmatprep.subr.bf16.mxu1 %v4375_v3 }
 0x6a9   : > { %4015 = vmatmul.mubr.msk.f32.vlgmr.msra.gmra.mrb[14].mxu1 %vm557_vm1, %v4546_v14 }
 0x6aa   : > { %4036 = vmatprep.mubr.msk.f32.mxu1 %vm4376_vm0, %v4377_v9  ;;  %4196 = vmatpush3.bf16.msra.mxu1 %v4195_v10 }
 0x6ab   : > { %4197 = vmatprep.subr.bf16.mxu1 %v4375_v3 }
 0x6ae   : > { %4199 = vmatpush3.bf16.msra.mxu1 %v4198_v13 }
 0x6af   : > { %4046 = vmatprep.subr.mxu1 %v4377_v9 }
 0x6b1   : > { %4037 = vmatmul.mubr.msk.f32.vlgmr.msra.gmra.mrb[16].mxu1 %vm557_vm1, %v4549_v15 }
 0x6b2   : > { %4048 = vmatprep.mubr.msk.f32.mxu1 %vm4376_vm0, %v4377_v9 }
 0x774   : > { %v1823_v17 = vpop.f32.mrb[12].mxu1 }
 0x775   : > { %v3995_v20 = vpop.f32.mrb[13].mxu1  ;;  %3999 = vmatmul.mubr.msk.f32.vlgmr.msra.gmra.mrb[10].mxu0 %vm783_vm2, %v1823_v17 }
 0x776   : > { %4002 = vmatpush3.msra.mxu0 %v1199_v16  ;;  %4003 = vmatprep.mubr.msk.f32.mxu0 %vm4376_vm0, %v4377_v9 }
 0x777   : > { %4188 = vmatprep.subr.bf16.mxu0 %v4375_v3 }
 0x77c   : > { %v2046_v29 = vpop.f32.mrb[14].mxu1 }
 0x77d   : > { %4004 = vmatmul.mubr.msk.f32.vlgmr.msra.gmra.mrb[10].mxu0 %vm783_vm2, %v4774_v8  ;;  %v4016_v30 = vpop.f32.mrb[15].mxu1  ;;  %v2050_v8 = vmul.f32 0.35355338, %v2046_v29 }
 0x77e   : > { %4190 = vmatpush3.bf16.msra.mxu0 %v4189_v24  ;;  %4025 = vmatprep.mubr.msk.f32.mxu0 %vm4376_vm0, %v4377_v9 }
 0x77f   : > { %4191 = vmatprep.subr.bf16.mxu0 %v4375_v3 }
 0x782   : > { %4193 = vmatpush3.bf16.msra.mxu0 %v4192_v31 }
 0x783   : > { %4200 = vmatprep.subr.bf16.mxu0 %v4375_v3 }
 0x784   : > { %v2197_v25 = vpop.f32.mrb[16].mxu1 }
 0x785   : > { %4026 = vmatmul.mubr.msk.f32.vlgmr.msra.gmra.mrb[12].mxu0 %vm557_vm1, %v4549_v15  ;;  %v4038_v26 = vpop.f32.mrb[17].mxu1 }
 0x786   : > { %4043 = vmatprep.mubr.msk.f32.mxu0 %vm4376_vm0, %v4377_v9 }
 0x78b   : > { %4203 = vmatpush3.bf16.xpose.msk.msra.mxu0 %vm4571_vm3, %v4567_v18 }
 0x78c   : > { %4056 = vmatprep.subr.mxu0 %v4377_v9 }
 0x792   : > { %4044 = vmatmul.mubr.msk.f32.vlgmr.msra.gmra.mrb[14].mxu0 %vm783_vm2, %v2050_v8 }
 0x793   : > { %4058 = vmatprep.mubr.msk.f32.mxu0 %vm4376_vm0, %v4377_v9 }
 0x858   : > { %v2122_v32 = vpop.f32.mrb[12].mxu0 }
 0x859   : > { %v4027_v34 = vpop.f32.mrb[13].mxu0  ;;  %4047 = vmatpush3.xpose.msk.msra.mxu1 %vm783_vm2, %v2122_v32 }
 0x85a   : > { %4051 = vmatprep.subr.mxu1 %v4377_v9 }
 0x85c   : > { %4049 = vmatmul.mubr.msk.f32.vlgmr.msra.gmra.mrb[18].mxu1 %vm783_vm2, %v2050_v8 }
 0x85d   : > { %4053 = vmatprep.mubr.msk.f32.mxu1 %vm4376_vm0, %v4377_v9  ;;  %4052 = vmatpush3.msra.mxu1 %v2197_v25  ;;  %v3769_v25 = vld [vmem:[%s5191_s6 + $0x70] sm:$0xff] }
 0x85e   : > { %4204 = vmatprep.subr.bf16.mxu1 %v4375_v3 }
 0x865   : > { %v2270_v15 = vpop.f32.mrb[14].mxu0 }
 0x866   : > { %v2275_v37 = vcombine.high %v2270_v15, %v2270_v15  ;;  %v2282_v38 = vrot.slane %v2270_v15, %v4592_v40  ;;  %v4045_v39 = vpop.f32.mrb[15].mxu0 }
 0x868   : > { %v2289_v41 = vrot.slane %v2275_v37, %v4592_v40  ;;  %v2290_v43 = vcombine.high %v2282_v38, %v2282_v38  ;;  %v2298_v44 = vrot.slane %v2282_v38, %v4592_v40 }
 0x86a   : > { %v2291_v27 = vcombine.high %v2289_v41, %v2289_v41  ;;  %v2305_v45 = vrot.slane %v2289_v41, %v4592_v40  ;;  %v2312_v46 = vrot.slane %v2290_v43, %v4592_v40  ;;  %v2320_v47 = vcombine.high %v2298_v44, %v2298_v44 }
 0x86b   : > { %v2327_v48 = vrot.slane %v2298_v44, %v4596_v49 }
 0x86c   : > { %v2331_v50 = vrot.slane %v2312_v46, %v4596_v49  ;;  %v2335_v57 = vrot.slane %v2320_v47, %v4596_v49  ;;  %v2322_v52 = vcombine.high %v2312_v46, %v2312_v46  ;;  %v2343_v54 = vrot.slane %v2305_v45, %v4596_v49 }
 0x86d   : > { %v2364_v53 = vmul.f32 %v4600_v51, %v2327_v48  ;;  %v2319_v55 = vrot.slane %v2291_v27, %v4592_v40  ;;  %v2321_v56 = vcombine.high %v2305_v45, %v2305_v45 }
 0x86e   : > { %v2365_v59 = vmul.f32 %v4618_v1, %v2331_v50  ;;  %v2366_v60 = vmul.f32 %v4608_v58, %v2335_v57  ;;  %v2339_v61 = vrot.slane %v2322_v52, %v4596_v49  ;;  %v2368_v6 = vmul.f32 %v4637_v23, %v2343_v54 }
 0x86f   : > { %v2372_v62 = vsel %vm961_vm9, %v2364_v53, 0.0  ;;  %v2347_v63 = vrot.slane %v2319_v55, %v4596_v49  ;;  %v2323_v0 = vcombine.high %v2319_v55, %v2319_v55  ;;  %v2351_v7 = vrot.slane %v2321_v56, %v4596_v49 }
 0x870   : > { %2373 = vadd.xlane.f32.xlu0 %v2372_v62  ;;  %v2375_v2 = vsel %vm961_vm9, %v2365_v59, 0.0  ;;  %v2367_v4 = vmul.f32 %v4626_v11, %v2339_v61  ;;  %v2378_v5 = vsel %vm961_vm9, %v2366_v60, 0.0  ;;  %v2384_v16 = vsel %vm961_vm9, %v2368_v6, 0.0 }
 0x871   : > { %2376 = vadd.xlane.f32.xlu1 %v2375_v2  ;;  %v2369_v12 = vmul.f32 %v4647_v33, %v2347_v63  ;;  %v2355_v13 = vrot.slane %v2323_v0, %v4596_v49  ;;  %v2370_v17 = vmul.f32 %v4651_v35, %v2351_v7  ;;  %v3757_v7 = vld [vmem:[%s5189_s4 + $0x60] sm:$0xff] }
 0x872   : > { %v2381_v10 = vsel %vm961_vm9, %v2367_v4, 0.0 }
 0x873   : > { %v2387_v20 = vsel %vm961_vm9, %v2369_v12, 0.0  ;;  %v2371_v21 = vmul.f32 %v4660_v42, %v2355_v13  ;;  %v2390_v22 = vsel %vm961_vm9, %v2370_v17, 0.0  ;;  %v3759_v17 = vld [vmem:[%s5189_s4 + $0x70] sm:$0xff] }
 0x874   : > { %2379 = vadd.xlane.f32.xlu0 %v2378_v5  ;;  %v3755_v5 = vld [vmem:[%s5192_s7 + $0x10] sm:$0xff] }
 0x875   : > { %2382 = vadd.xlane.f32.xlu1 %v2381_v10  ;;  %v2393_v24 = vsel %vm961_vm9, %v2371_v21, 0.0  ;;  %4057 = vmatpush3.msra.mxu0 %v3755_v5  ;;  %v3758_v10 = vld [vmem:[%s5189_s4 + $0x68] sm:$0xff] }
 0x876   : > { %4210 = vmatprep.subr.bf16.mxu0 %v4375_v3  ;;  %v4205_v13 = vpack.c.bf16 %v3758_v10, %v3757_v7 }
 0x878   : > { %2385 = vadd.xlane.f32.xlu0 %v2384_v16 }
 0x879   : > { %2388 = vadd.xlane.f32.xlu1 %v2387_v20  ;;  %v3760_v20 = vld [vmem:[%s5189_s4 + $0x78] sm:$0xff] }
 0x87a   : > { %v4208_v21 = vpack.c.bf16 %v3760_v20, %v3759_v17 }
 0x87c   : > { %2391 = vadd.xlane.f32.xlu0 %v2390_v22  ;;  %v3767_v22 = vld [vmem:[%s5191_s6 + $0x60] sm:$0xff] }
 0x87d   : > { %2394 = vadd.xlane.f32.xlu1 %v2393_v24  ;;  %v3768_v24 = vld [vmem:[%s5191_s6 + $0x68] sm:$0xff] }
 0x87e   : > { %v4217_v26 = vpack.c.bf16 %v3768_v24, %v3767_v22 }
 0x8fd   : > { %v2374_v29 = vpop.xlane.xlu0 %2373 }
 0x8fe   : > { %v2377_v30 = vpop.xlane.xlu1 %2376  ;;  %v2407_v31 = vrot.slane %v2374_v29, %v4590_v28 }
 0x8ff   : > { %v2411_v8 = vrot.slane %v2377_v30, %v4590_v28  ;;  %v4309_v30 = vld [vmem:[%s4543_s16] sm:$0xff] }
 0x901   : > { %v2380_v32 = vpop.xlane.xlu0 %2379  ;;  %v2436_v37 = vsel %vm1026_vm5, %v2411_v8, %v2407_v31  ;;  %v3762_v31 = vld [vmem:[%s5190_s5 + $0x60] sm:$0xff]  ;;  %v3763_v8 = vld [vmem:[%s5190_s5 + $0x68] sm:$0xff] }
 0x902   : > { %v2415_v34 = vrot.slane %v2380_v32, %v4590_v28  ;;  %v2383_v15 = vpop.xlane.xlu1 %2382  ;;  %v4211_v32 = vpack.c.bf16 %v3763_v8, %v3762_v31 }
 0x903   : > { %v2419_v38 = vrot.slane %v2383_v15, %v4590_v28  ;;  %v3765_v15 = vld [vmem:[%s5190_s5 + $0x78] sm:$0xff] }
 0x904   : > { %v2437_v41 = vsel %vm1028_vm6, %v2415_v34, %v2436_v37  ;;  %v3764_v34 = vld [vmem:[%s5190_s5 + $0x70] sm:$0xff] }
 0x905   : > { %v2386_v39 = vpop.xlane.xlu0 %2385  ;;  %v2438_v27 = vsel %vm1030_vm7, %v2419_v38, %v2437_v41 }
 0x906   : > { %v2423_v43 = vrot.slane %v2386_v39, %v4590_v28  ;;  %v2389_v44 = vpop.xlane.xlu1 %2388  ;;  %v4214_v39 = vpack.c.bf16 %v3765_v15, %v3764_v34 }
 0x907   : > { %v2427_v45 = vrot.slane %v2389_v44, %v4590_v28 }
 0x908   : > { %v2439_v47 = vsel %vm1032_vm8, %v2423_v43, %v2438_v27 }
 0x909   : > { %v2392_v46 = vpop.xlane.xlu0 %2391  ;;  %v2440_v57 = vsel %vm1034_vm10, %v2427_v45, %v2439_v47 }
 0x90a   : > { %v2431_v48 = vrot.slane %v2392_v46, %v4590_v28  ;;  %v2395_v50 = vpop.xlane.xlu1 %2394 }
 0x90b   : > { %v2435_v52 = vrot.slane %v2395_v50, %v4590_v28 }
 0x90c   : > { %v2441_v53 = vsel %vm1036_vm11, %v2431_v48, %v2440_v57 }
 0x90d   : > { %v2442_v54 = vsel %vm1038_vm12, %v2435_v52, %v2441_v53 }
 0x92f   : > { %v2513_v55 = vpop.f32.mrb[18].mxu1 }
 0x930   : > { %v2514_v56 = vadd.f32 %v2513_v55, %v2442_v54  ;;  %v4050_v59 = vpop.f32.mrb[19].mxu1 }
 0x932   : > { %v2517_v60 = vadd.f32 %v2514_v56, %v4720_v36 }
 0x934   : > { %v2518_v61 = vsel %vm783_vm2, %v2517_v60, -inf }
 0x935   : > { %2519 = vmax.xlane.f32.xlu0 %v2518_v61 }
 0x9c2   : > { %v2520_v62 = vpop.xlane.xlu0 %2519 }
 0x9c3   : > { %v2521_v63 = vsub.f32 %v2517_v60, %v2520_v62 }
 0x9c5   : > { %v2522_v0 = vmul.f32 1.442695, %v2521_v63 }
 0x9c7   : > { %4295 = vpow2.f32 %v2522_v0 }
 0x9d1   : > { %v4296_v2 = vpop.eup %4295 }
 0x9d2   : > { %v2524_v4 = vsel %vm783_vm2, %v4296_v2, 0.0 }
 0x9d3   : > { %2525 = vadd.xlane.f32.xlu1 %v2524_v4 }
 0xa60   : > { %v2526_v6 = vpop.xlane.xlu1 %2525 }
 0xa61   : > { %4297 = vrcp.f32 %v2526_v6 }
 0xa6b   : > { %v4298_v12 = vpop.eup %4297 }
 0xa6c   : > { %v2528_v16 = vmul.f32 %v4298_v12, %v4296_v2 }
 0xa6e   : > { %4054 = vmatmul.mubr.msk.f32.vlgmr.msra.gmra.mrb[20].mxu1 %vm783_vm2, %v2528_v16 }
 0xa6f   : > { %4206 = vmatpush3.bf16.msra.mxu1 %v4205_v13  ;;  %4069 = vmatprep.mubr.msk.f32.mxu1 %vm4376_vm0, %v4377_v9 }
 0xa70   : > { %4207 = vmatprep.subr.bf16.mxu1 %v4375_v3 }
 0xa73   : > { %4209 = vmatpush3.bf16.msra.mxu1 %v4208_v21 }
 0xa74   : > { %4216 = vmatprep.subr.bf16.mxu1 %v4375_v3 }
 0xa76   : > { %4070 = vmatmul.mubr.msk.f32.vlgmr.msra.gmra.mrb[22].mxu1 %vm557_vm1, %v4546_v14  ;;  %v3770_v14 = vld [vmem:[%s5191_s6 + $0x78] sm:$0xff] }
 0xa77   : > { %4091 = vmatprep.mubr.msk.f32.mxu1 %vm4376_vm0, %v4377_v9  ;;  %4218 = vmatpush3.bf16.msra.mxu1 %v4217_v26  ;;  %v4220_v29 = vpack.c.bf16 %v3770_v14, %v3769_v25 }
 0xa78   : > { %4219 = vmatprep.subr.bf16.mxu1 %v4375_v3 }
 0xa7b   : > { %4221 = vmatpush3.bf16.msra.mxu1 %v4220_v29 }
 0xa7c   : > { %4101 = vmatprep.subr.mxu1 %v4377_v9 }
 0xa7e   : > { %4092 = vmatmul.mubr.msk.f32.vlgmr.msra.gmra.mrb[24].mxu1 %vm557_vm1, %v4309_v30 }
 0xa7f   : > { %4103 = vmatprep.mubr.msk.f32.mxu1 %vm4376_vm0, %v4377_v9 }
 0xb41   : > { %v2598_v37 = vpop.f32.mrb[20].mxu1 }
 0xb42   : > { %v4055_v38 = vpop.f32.mrb[21].mxu1  ;;  %4059 = vmatmul.mubr.msk.f32.vlgmr.msra.gmra.mrb[10].mxu0 %vm783_vm2, %v2598_v37 }
 0xb43   : > { %4212 = vmatpush3.bf16.msra.mxu0 %v4211_v32  ;;  %4080 = vmatprep.mubr.msk.f32.mxu0 %vm4376_vm0, %v4377_v9 }
 0xb44   : > { %4213 = vmatprep.subr.bf16.mxu0 %v4375_v3 }
 0xb47   : > { %4215 = vmatpush3.bf16.msra.mxu0 %v4214_v39 }
 0xb48   : > { %4222 = vmatprep.subr.bf16.mxu0 %v4375_v3 }
 0xb49   : > { %v2749_v41 = vpop.f32.mrb[22].mxu1 }
 0xb4a   : > { %4081 = vmatmul.mubr.msk.f32.vlgmr.msra.gmra.mrb[16].mxu0 %vm557_vm1, %v4309_v30  ;;  %v4071_v43 = vpop.f32.mrb[23].mxu1  ;;  %v2753_v44 = vmul.f32 0.35355338, %v2749_v41 }
 0xb4b   : > { %4098 = vmatprep.mubr.msk.f32.mxu0 %vm4376_vm0, %v4377_v9 }
 0xb50   : > { %4225 = vmatpush3.bf16.xpose.msk.msra.mxu0 %vm4571_vm3, %v4567_v18 }
 0xb51   : > { %4106 = vmatprep.subr.mxu0 %v4377_v9 }
 0xb57   : > { %4099 = vmatmul.mubr.msk.f32.vlgmr.msra.gmra.mrb[18].mxu0 %vm783_vm2, %v2753_v44 }
 0xb58   : > { %4108 = vmatprep.mubr.msk.f32.mxu0 %vm4376_vm0, %v4377_v9 }
 0xc1d   : > { %v2825_v27 = vpop.f32.mrb[16].mxu0 }
 0xc1e   : > { %v4082_v45 = vpop.f32.mrb[17].mxu0  ;;  %4102 = vmatpush3.xpose.msk.msra.mxu1 %vm783_vm2, %v2825_v27 }
 0xc1f   : > { %4226 = vmatprep.subr.bf16.mxu1 %v4375_v3 }
 0xc21   : > { %4104 = vmatmul.mubr.msk.f32.vlgmr.msra.gmra.mrb[26].mxu1 %vm783_vm2, %v2753_v44 }
 0xc22   : > { %4124 = vmatprep.mubr.msk.f32.mxu1 %vm4376_vm0, %v4377_v9 }
 0xc2a   : > { %v2973_v18 = vpop.f32.mrb[18].mxu0 }
 0xc2b   : > { %v2978_v19 = vcombine.high %v2973_v18, %v2973_v18  ;;  %v2985_v46 = vrot.slane %v2973_v18, %v4592_v40  ;;  %v4100_v47 = vpop.f32.mrb[19].mxu0 }
 0xc2d   : > { %v2992_v48 = vrot.slane %v2978_v19, %v4592_v40  ;;  %v2993_v50 = vcombine.high %v2985_v46, %v2985_v46  ;;  %v3001_v57 = vrot.slane %v2985_v46, %v4592_v40 }
 0xc2f   : > { %v2994_v52 = vcombine.high %v2992_v48, %v2992_v48  ;;  %v3008_v53 = vrot.slane %v2992_v48, %v4592_v40  ;;  %v3015_v54 = vrot.slane %v2993_v50, %v4592_v40  ;;  %v3023_v55 = vcombine.high %v3001_v57, %v3001_v57 }
 0xc30   : > { %v3030_v56 = vrot.slane %v3001_v57, %v4596_v49 }
 0xc31   : > { %v3034_v59 = vrot.slane %v3015_v54, %v4596_v49  ;;  %v3038_v60 = vrot.slane %v3023_v55, %v4596_v49  ;;  %v3025_v61 = vcombine.high %v3015_v54, %v3015_v54  ;;  %v3046_v63 = vrot.slane %v3008_v53, %v4596_v49 }
 0xc32   : > { %v3067_v62 = vmul.f32 %v4600_v51, %v3030_v56  ;;  %v3022_v0 = vrot.slane %v2994_v52, %v4592_v40  ;;  %v3024_v2 = vcombine.high %v3008_v53, %v3008_v53 }
 0xc33   : > { %v3068_v4 = vmul.f32 %v4618_v1, %v3034_v59  ;;  %v3069_v5 = vmul.f32 %v4608_v58, %v3038_v60  ;;  %v3042_v6 = vrot.slane %v3025_v61, %v4596_v49  ;;  %v3071_v16 = vmul.f32 %v4637_v23, %v3046_v63  ;;  %v3778_v63 = vld [vmem:[%s5192_s7 + $0x18] sm:$0xff] }
 0xc34   : > { %v3075_v7 = vsel %vm961_vm9, %v3067_v62, 0.0  ;;  %v3050_v10 = vrot.slane %v3022_v0, %v4596_v49  ;;  %v3026_v12 = vcombine.high %v3022_v0, %v3022_v0  ;;  %v3054_v1 = vrot.slane %v3024_v2, %v4596_v49  ;;  %v3386_v0 = vld [vmem:[%s5194_s9 + $0x8] sm:$0xff] }
 0xc35   : > { %3076 = vadd.xlane.f32.xlu0 %v3075_v7  ;;  %v3078_v13 = vsel %vm961_vm9, %v3068_v4, 0.0  ;;  %v3070_v51 = vmul.f32 %v4626_v11, %v3042_v6  ;;  %v3081_v40 = vsel %vm961_vm9, %v3069_v5, 0.0  ;;  %v3087_v21 = vsel %vm961_vm9, %v3071_v16, 0.0  ;;  %v3387_v4 = vld [vmem:[%s5194_s9 + $0x10] sm:$0xff]  ;;  %v3388_v5 = vld [vmem:[%s5194_s9 + $0x18] sm:$0xff]  ;;  %v3381_v7 = vld [vmem:[%s5193_s8] sm:$0xff] }
 0xc36   : > { %3079 = vadd.xlane.f32.xlu1 %v3078_v13  ;;  %v3072_v17 = vmul.f32 %v4647_v33, %v3050_v10  ;;  %v3058_v20 = vrot.slane %v3026_v12, %v4596_v49  ;;  %v3073_v22 = vmul.f32 %v4651_v35, %v3054_v1  ;;  %v2900_v33 = vpop.f32.mrb[24].mxu1  ;;  %v4230_v6 = vpack.c.bf16 %v3388_v5, %v3387_v4  ;;  %v3382_v10 = vld [vmem:[%s5193_s8 + $0x8] sm:$0xff]  ;;  %v3383_v13 = vld [vmem:[%s5193_s8 + $0x10] sm:$0xff] }
 0xc37   : > { %v3084_v58 = vsel %vm961_vm9, %v3070_v51, 0.0  ;;  %v4093_v49 = vpop.f32.mrb[25].mxu1  ;;  %4107 = vmatpush3.msra.mxu0 %v2900_v33  ;;  %v4233_v12 = vpack.c.bf16 %v3382_v10, %v3381_v7  ;;  %v3384_v51 = vld [vmem:[%s5193_s8 + $0x18] sm:$0xff] }
 0xc38   : > { %v3090_v11 = vsel %vm961_vm9, %v3072_v17, 0.0  ;;  %v3074_v24 = vmul.f32 %v4660_v42, %v3058_v20  ;;  %v3093_v23 = vsel %vm961_vm9, %v3073_v22, 0.0  ;;  %4111 = vmatprep.subr.mxu0 %v4377_v9  ;;  %v4236_v1 = vpack.c.bf16 %v3384_v51, %v3383_v13 }
 0xc39   : > { %3082 = vadd.xlane.f32.xlu0 %v3081_v40 }
 0xc3a   : > { %3085 = vadd.xlane.f32.xlu1 %v3084_v58  ;;  %v3096_v25 = vsel %vm961_vm9, %v3074_v24, 0.0  ;;  %v4310_v58 = vld [vmem:[%s4538_s24] sm:$0xff]  ;;  %s455_s24 = sand.u32 1, %s4365_s26  }
 0xc3b   : > { %v3782_v24 = vld [vmem:[%s5195_s10] ss:$0 sm:$0xff]  ;;  %s3682_s15 = sshll.u32 %s455_s24, 3  ;;  %s3582_s16 = scalar_lea.sflag [#allocation3], %s455_s24 }
 0xc3c   : > { %s457_s1 = scalar_lea.vmem [#allocation2], %s3682_s15  ;;  %s4315_s15 = sshll.u32 %s4379_s29, 4  ;;  %s4316_s15 = int_to_ptr.vmem [resolvable:$false] %s4315_s15 }
 0xc3d   : > { %3088 = vadd.xlane.f32.xlu0 %v3087_v21  ;;  %s3595_s2 = sshll.u32 %s457_s1, 4  ;;  %s4317_s20 = scalar_lea.vmem %s4316_s15, 256  ;;  %s5144_s2 = int_to_ptr.vmem [resolvable:$true] %s3595_s2 }
 0xc3e   : > { %3091 = vadd.xlane.f32.xlu1 %v3090_v11  ;;  %s4311_s22 = scalar_lea.vmem %s5144_s2, 128  ;;  %p4318_p0 = scmp.lt.s32.totalorder %s5144_s2, %s4316_s15 }
 0xc3f   : > { %p4312_p11 = scmp.ne.s32.totalorder %s5144_s2, %s4311_s22  ;;  %p4319_p1 = scmp.lt.s32.totalorder %s4317_s20, %s4311_s22 }
 0xc41   : > { %3094 = vadd.xlane.f32.xlu0 %v3093_v23  ;;  %p4313_p12 = pnand %p4312_p11, %p4488_p5  ;;  %p4320_p2 = por %p4319_p1, %p4318_p0 }
 0xc42   : > { %3097 = vadd.xlane.f32.xlu1 %v3096_v25 }
 0xc43   : > { %p4314_p13 = pneg %p4313_p12 }
 0xc45   : > { %p4321_p3 = pnand %p4320_p2, %p4314_p13 }
 0xcc2   : > { %v3077_v26 = vpop.xlane.xlu0 %3076 }
 0xcc3   : > { %v3080_v14 = vpop.xlane.xlu1 %3079  ;;  %v3110_v35 = vrot.slane %v3077_v26, %v4590_v28 }
 0xcc4   : > { %v3114_v29 = vrot.slane %v3080_v14, %v4590_v28 }
 0xcc6   : > { %v3083_v42 = vpop.xlane.xlu0 %3082  ;;  %v3139_v8 = vsel %vm1026_vm5, %v3114_v29, %v3110_v35 }
 0xcc7   : > { %v3118_v30 = vrot.slane %v3083_v42, %v4590_v28  ;;  %v3086_v31 = vpop.xlane.xlu1 %3085 }
 0xcc8   : > { %v3122_v32 = vrot.slane %v3086_v31, %v4590_v28 }
 0xcc9   : > { %v3140_v15 = vsel %vm1028_vm6, %v3118_v30, %v3139_v8 }
 0xcca   : > { %v3089_v34 = vpop.xlane.xlu0 %3088  ;;  %v3141_v39 = vsel %vm1030_vm7, %v3122_v32, %v3140_v15 }
 0xccb   : > { %v3126_v37 = vrot.slane %v3089_v34, %v4590_v28  ;;  %v3092_v38 = vpop.xlane.xlu1 %3091 }
 0xccc   : > { %v3130_v41 = vrot.slane %v3092_v38, %v4590_v28 }
 0xccd   : > { %v3142_v44 = vsel %vm1032_vm8, %v3126_v37, %v3141_v39 }
 0xcce   : > { %v3095_v43 = vpop.xlane.xlu0 %3094  ;;  %v3143_v18 = vsel %vm1034_vm10, %v3130_v41, %v3142_v44 }
 0xccf   : > { %v3134_v27 = vrot.slane %v3095_v43, %v4590_v28  ;;  %v3098_v45 = vpop.xlane.xlu1 %3097  ;;  %v3784_v43 = vld [vmem:[%s5196_s11] ss:$0 sm:$0xff] }
 0xcd0   : > { %v3138_v19 = vrot.slane %v3098_v45, %v4590_v28 }
 0xcd1   : > { %v3144_v46 = vsel %vm1036_vm11, %v3134_v27, %v3143_v18  ;;  %v3785_v27 = vld [vmem:[%s5197_s12] ss:$0 sm:$0xff] }
 0xcd2   : > { %v3145_v47 = vsel %vm1038_vm12, %v3138_v19, %v3144_v46 }
 0xcf4   : > { %v3216_v48 = vpop.f32.mrb[26].mxu1 }
 0xcf5   : > { %v3217_v50 = vadd.f32 %v3216_v48, %v3145_v47  ;;  %v4105_v57 = vpop.f32.mrb[27].mxu1 }
 0xcf7   : > { %v3220_v52 = vadd.f32 %v3217_v50, %v4720_v36  ;;  %v3385_v36 = vld [vmem:[%s5194_s9] sm:$0xff] }
 0xcf8   : > { %v4227_v2 = vpack.c.bf16 %v3386_v0, %v3385_v36 }
 0xcf9   : > { %v3221_v53 = vsel %vm783_vm2, %v3220_v52, -inf }
 0xcfa   : > { %3222 = vmax.xlane.f32.xlu0 %v3221_v53  ;;  %4228 = vmatpush3.bf16.msra.mxu1 %v4227_v2 }
 0xcfb   : > { %4229 = vmatprep.subr.bf16.mxu1 %v4375_v3 }
 0xcfe   : > { %4231 = vmatpush3.bf16.msra.mxu1 %v4230_v6 }
 0xd87   : > { %v3223_v54 = vpop.xlane.xlu0 %3222 }
 0xd88   : > { %v3224_v55 = vsub.f32 %v3220_v52, %v3223_v54 }
 0xd8a   : > { %v3225_v56 = vmul.f32 1.442695, %v3224_v55 }
 0xd8c   : > { %4299 = vpow2.f32 %v3225_v56 }
 0xd96   : > { %v4300_v59 = vpop.eup %4299 }
 0xd97   : > { %v3227_v60 = vsel %vm783_vm2, %v4300_v59, 0.0 }
 0xd98   : > { %3228 = vadd.xlane.f32.xlu1 %v3227_v60 }
 0xe25   : > { %v3229_v28 = vpop.xlane.xlu1 %3228 }
 0xe26   : > { %4301 = vrcp.f32 %v3229_v28 }
 0xe30   : > { %v4302_v61 = vpop.eup %4301 }
 0xe31   : > { %v3231_v62 = vmul.f32 %v4302_v61, %v4300_v59 }
 0xe33   : > { %4109 = vmatmul.mubr.msk.f32.vlgmr.msra.gmra.mrb[20].mxu0 %vm783_vm2, %v3231_v62 }
 0xe34   : > { %4112 = vmatpush3.msra.mxu0 %v3778_v63  ;;  %4113 = vmatprep.mubr.msk.f32.mxu0 %vm4376_vm0, %v4377_v9 }
 0xe35   : > { %4232 = vmatprep.subr.bf16.mxu0 %v4375_v3 }
 0xf06   : > { %v3301_v40 = vpop.f32.mrb[20].mxu0 }
 0xf07   : > { %v4110_v16 = vpop.f32.mrb[21].mxu0  ;;  %4114 = vmatmul.mubr.msk.f32.vlgmr.msra.gmra.mrb[10].mxu0 %vm783_vm2, %v3301_v40 }
 0xf08   : > { %4234 = vmatpush3.bf16.msra.mxu0 %v4233_v12  ;;  %4135 = vmatprep.mubr.msk.f32.mxu0 %vm4376_vm0, %v4377_v9 }
 0xf09   : > { %4235 = vmatprep.subr.bf16.mxu0 %v4375_v3 }
 0xf0c   : > { %4237 = vmatpush3.bf16.msra.mxu0 %v4236_v1 }
 0xf0f   : > { %4136 = vmatmul.mubr.msk.f32.vlgmr.msra.gmra.mrb[22].mxu0 %vm557_vm1, %v4310_v58 }
 0xfda   : > { %v3376_v17 = vpop.f32.mrb[10].mxu0 }
 0xfdb   : > { %v4115_v20 = vpop.f32.mrb[11].mxu0  ;;  %4125 = vmatmul.mubr.msk.f32.vlgmr.msra.gmra.mrb[28].mxu1 %vm557_vm1, %v3376_v17 }
 0xfe2   : > { %v3528_v21 = vpop.f32.mrb[22].mxu0 }
 0xfe3   : > { %v4137_v22 = vpop.f32.mrb[23].mxu0 }
0x10ae   : > { %v3458_v11 = vpop.f32.mrb[28].mxu1 }
0x10af   : > { %v3529_v23 = vadd.f32 %v3528_v21, %v3458_v11  ;;  %v4126_v25 = vpop.f32.mrb[29].mxu1 }
0x10b1   : > { %v3539_v9 = vadd.f32 %v3782_v24, %v3529_v23 }
0x10b3   : > { %v3783_v33 = vmul.f32 -1.442695, %v3539_v9 }
0x10b5   : > { %4303 = vpow2.f32 %v3783_v33 }
0x10bf   : > { %v4304_v3 = vpop.eup %4303 }
0x10c0   : > { %v3543_v49 = vadd.f32 1.0, %v4304_v3 }
0x10c2   : > { %4305 = vrcp.f32 %v3543_v49 }
0x10cc   : > { %v4306_v26 = vpop.eup %4305 }
0x10cd   : > { %v3547_v14 = vsub.f32 1.0, %v4306_v26  ;;  %v3546_v35 = vmul.f32 %v4310_v58, %v4306_v26 }
0x10cf   : > { %v3548_v29 = vmul.f32 %v3547_v14, %v3376_v17 }
0x10d1   : > { %v3549_v42 = vadd.f32 %v3548_v29, %v3546_v35 }
0x10d3   : > { %v3550_v30 = vsel %vm557_vm1, %v3549_v42, 0.0 }
0x10d4   : > { %3551 = vadd.xlane.f32.xlu0 %v3550_v30 }
0x1161   : > { %v3552_v31 = vpop.xlane.xlu0 %3551 }
0x1162   : > { %v3554_v8 = vmul.f32 0.03125, %v3552_v31 }
0x1164   : > { %v3555_v32 = vsub.f32 %v3549_v42, %v3554_v8 }
0x1166   : > { %v3556_v34 = vmul.f32 %v3555_v32, %v3555_v32 }
0x1168   : > { %v3557_v15 = vsel %vm557_vm1, %v3556_v34, 0.0 }
0x1169   : > { %3558 = vadd.xlane.f32.xlu1 %v3557_v15 }
0x11f6   : > { %v3559_v37 = vpop.xlane.xlu1 %3558 }
0x11f7   : > { %v3560_v38 = vmul.f32 0.03125, %v3559_v37 }
0x11f9   : > { %v3561_v39 = vadd.f32 1e-05, %v3560_v38 }
0x11fb   : > { %4307 = vrsqrt.f32 %v3561_v39 }
0x1205   : > { %v4308_v41 = vpop.eup %4307 }
0x1206   : > { %v3563_v44 = vmul.f32 %v4308_v41, %v3555_v32 }
0x1208   : > { %v3571_v45 = vmul.f32 %v3784_v43, %v3563_v44 }
0x120a   : > { %v3579_v18 = vadd.f32 %v3785_v27, %v3571_v45 }
0x120c   : > { %3580 = vst.msk [vmem:[%s457_s1] sm:$0xff] %vm557_vm1, %v3579_v18 }
0x120d   : > { %4324 = shalt.err (!%p4321_p3)
}
0x120e   : > { %s4325_s24 = scalar_lea.hbm %s5142_s30, 128  ;;  %s4329_s1 = scalar_lea.hbm %s5198_s13, 256 }
0x120f   : > { %p4326_p4 = scmp.ne.s32.totalorder %s5142_s30, %s4325_s24  ;;  %p4330_p9 = scmp.lt.u32.totalorder %s5142_s30, %s5198_s13 }
0x1210   : > { %p4331_p10 = scmp.lt.u32.totalorder %s4329_s1, %s4325_s24  ;;  %p4333_p12 = scmp.lt.u32.totalorder %s4325_s24, %s5142_s30 }
0x1211   : > { %p4327_p7 = pnand %p4326_p4, %p4488_p5 }
0x1212   : > { %p4332_p11 = por %p4331_p10, %p4330_p9 }
0x1213   : > { %p4328_p8 = pneg %p4327_p7 }
0x1214   : > { %p4334_p13 = por %p4333_p12, %p4332_p11 }
0x1216   : > { %p4335_p0 = pnand %p4334_p13, %p4328_p8 }
0x1218   : > { %4338 = shalt.err (!%p4335_p0)
}
0x1219   : > { %4244 = dma.vmem_to_hbm [thread:$0]  (%p4488_p5), %s5144_s2, 128, %s5142_s30, %s3582_s16  }
0x121a PF: > { %p4250_p1 = scmp.ge.s32.totalorder %s4373_s28, 2  ;;  %s3607_s22 = sand.u32 1, %s4361_s25  }
0x121b   : > { %s3608_s29 = scalar_lea.sflag [#allocation3], %s3607_s22 }
0x121c   : > { %p4247_p2 = pnand %p4250_p1, %p4492_p6 }
0x121e   : > { %4356 = dma.done.wait (!%p4247_p2), %s3608_s29, 128  }
0x121f   : > { %4358 = vsyncadd (!%p4247_p2), %s3608_s29, 4294967168  ;;  %s5210_s15 = sld [smem:[#allocation5_spill]]  ;;  %p23_p3 = scmp.ge.s32.totalorder %s4475_s14, 4  }
0x1220   : > { %s5211_s25 = smov %s4365_s26  ;;  %s5212_s26 = smov %s4369_s27 }
0x1221   : > { %s5214_s28 = smov %s4475_s14  ;;  %25 = sbr.rel (!%p23_p3) target bundleno = 7 (0x7), region = 125 }
0x1225   : > { %s5213_s27 = smov %s5210_s15 }
0x1228   :  { %3613 = vsyncpa [#allocation3], 1 }
0x1229   :  { %3615 = vsyncpa [#allocation3 + $0x1], 1 }

</bundles_post_ra>
